<compile_context>
chip_gen: v5e
topology: v5e:2x2
jax: 0.10.0
libtpu: 0.0.40
codegen_flags: <defaults>
</compile_context>

<pallas_src>
import functools

import jax
import jax.numpy as jnp
from jax.experimental import pallas as pl
from jax.experimental.pallas import tpu as pltpu

EPS = 1e-5  # PyTorch BatchNorm2d default eps


def _dbb_kernel(x_ref, m_ref, b_ref, g_ref, bt_ref, o_ref, *, channels, height):
    NH, WC = x_ref.shape
    inv_cnt = 1.0 / float(NH * (WC // channels))          # 1 / (N*H*W)

    # Per-image halo masks over the flat (N*H, W*C) layout: row r is image row
    # h = r % H, so the dy=-1 tap is invalid at h == 0 and dy=+1 at h == H-1.
    # Hoisted once: JAX does not CSE broadcast/iota across the four conv calls.
    row = jax.lax.broadcasted_iota(jnp.int32, (NH, WC), 0)
    h = row % height
    top_mask = h == 0
    bot_mask = h == height - 1

    def conv(k, act):
        # One MXU matmul per conv: dy taps concatenated along K (K = 3*WC), kx
        # taps + Cin folded into the block-banded bf16 weight; bias is added to
        # the f32 accumulator result.  The halo slabs are in-register sublane
        # rolls + boundary selects — no VMEM scratch round trip.
        up = jnp.where(top_mask, 0.0, pltpu.roll(act, 1, axis=0))        # act[h-1]
        dn = jnp.where(bot_mask, 0.0, pltpu.roll(act, NH - 1, axis=0))   # act[h+1]
        lhs = jnp.concatenate([up, act, dn], axis=1).astype(jnp.bfloat16)
        return jnp.dot(lhs, m_ref[k], preferred_element_type=jnp.float32) + b_ref[k]

    def channel_sums(v):
        # (rows, WC) -> (1, WC): per-channel totals replicated across every w
        # position (lane l accumulates all lanes with the same l % channels).
        if v.shape[0] % 8 == 0:
            part = jnp.sum(v.reshape(-1, 8, WC), axis=0)                 # (8, WC)
        else:
            part = jnp.sum(v, axis=0, keepdims=True)                     # (1, WC)
        w_pos = WC // channels
        if w_pos & (w_pos - 1) == 0:                         # power of two: log-tree
            t = part
            shift = channels
            while shift < WC:
                t = t + pltpu.roll(t, shift, 1)
                shift *= 2
        else:                                                # generic linear fold
            t = part
            for j in range(1, w_pos):
                t = t + pltpu.roll(part, j * channels, 1)
        return jnp.sum(t, axis=0, keepdims=True)

    def batchnorm(k, a):
        # Train-mode BN: biased batch variance over N*H*W, two-pass, all in f32
        # (avoids the E[x^2]-mu^2 cancellation caveat).
        mu = channel_sums(a) * inv_cnt
        d = a - mu
        var = channel_sums(d * d) * inv_cnt
        return d * jax.lax.rsqrt(var + EPS) * g_ref[k] + bt_ref[k]

    x = x_ref[...].astype(jnp.float32)                       # (N*H, W*C), lane-dense

    # BasicBlock 1: conv1 -> bn1 -> relu -> conv2 -> bn2 + identity -> relu
    a = jnp.maximum(batchnorm(0, conv(0, x)), 0.0)
    y1 = jnp.maximum(batchnorm(1, conv(1, a)) + x, 0.0)
    # BasicBlock 2
    a = jnp.maximum(batchnorm(2, conv(2, y1)), 0.0)
    y2 = jnp.maximum(batchnorm(3, conv(3, a)) + y1, 0.0)

    o_ref[...] = y2.astype(o_ref.dtype)


def _build_banded(w, width):
    """Torch conv weight (Cout, Cin, 3, 3) -> (3, width*Cin, width*Cout).

    m[d, w_in*Cin + ci, w_out*Cout + co] = w[co, ci, d, w_in - w_out + 1]
    for |w_in - w_out| <= 1, else 0 — i.e. the kx taps + Cin contraction of one
    kernel row expressed as a single block-tridiagonal matmul over packed lanes.
    Zero padding along W falls out of the band structure automatically.
    """
    cin, cout = w.shape[1], w.shape[0]
    wt = jnp.transpose(w, (2, 3, 1, 0))                      # (kh, kw, Cin, Cout)
    wi = jnp.arange(width)[:, None]
    wo = jnp.arange(width)[None, :]
    dx = wi - wo + 1
    valid = ((dx >= 0) & (dx <= 2)).astype(w.dtype)
    blocks = wt[:, jnp.clip(dx, 0, 2)] * valid[None, :, :, None, None]
    return jnp.transpose(blocks, (0, 1, 3, 2, 4)).reshape(3, width * cin, width * cout)


@jax.jit
def double_basic_block(x_nchw, conv_w, conv_b, bn_gamma, bn_beta):
    """x: (N, C, H, W); conv_w: (4, C, C, 3, 3) torch layout; conv_b/bn_*: (4, C)."""
    N, C, H, W = x_nchw.shape
    WC = W * C
    NH = N * H

    # NCHW -> packed (N*H, W*C) lane-dense layout (lane index = w*C + c).
    # TODO(synk): callers that can supply NHWC / packed layout directly avoid
    #             these two wrapper transposes entirely.
    x_packed = jnp.transpose(x_nchw, (0, 2, 3, 1)).reshape(NH, WC)

    # (4, 3*WC, WC) bf16: the dy taps are stacked along K so each conv is one dot.
    m_all = jnp.stack([_build_banded(conv_w[k], W) for k in range(4)], axis=0)
    m_all = m_all.reshape(4, 3 * WC, WC).astype(jnp.bfloat16)
    bias_p = jnp.tile(conv_b, (1, W)).reshape(4, 1, WC)
    gamma_p = jnp.tile(bn_gamma, (1, W)).reshape(4, 1, WC)
    beta_p = jnp.tile(bn_beta, (1, W)).reshape(4, 1, WC)

    # Honest cost hint: only the real 3x3xCin MACs (not the band's structural
    # zeros), bf16 weight bytes, f32 activation in/out.
    flops = 4 * 2 * NH * W * C * 9 * C + 4 * 12 * NH * WC
    bytes_accessed = 2 * NH * WC * 4 + int(m_all.size) * 2 + 3 * 4 * WC * 4
    cost = pl.CostEstimate(flops=flops, transcendentals=4 * WC,
                           bytes_accessed=bytes_accessed)

    out = pl.pallas_call(
        functools.partial(_dbb_kernel, channels=C, height=H),
        out_shape=jax.ShapeDtypeStruct((NH, WC), jnp.float32),
        in_specs=[pl.BlockSpec(memory_space=pltpu.MemorySpace.VMEM)] * 5,
        out_specs=pl.BlockSpec(memory_space=pltpu.MemorySpace.VMEM),
        cost_estimate=cost,
    )(x_packed, m_all, bias_p, gamma_p, beta_p)

    return jnp.transpose(out.reshape(N, H, W, C), (0, 3, 1, 2))


def _ref_forward(x_nchw, conv_w, conv_b, bn_gamma, bn_beta):
    """Pure-JAX reference (same math as the PyTorch module in train mode)."""
    x = jnp.transpose(x_nchw, (0, 2, 3, 1)).astype(jnp.float32)
    N, H, W, C = x.shape
    hp = jax.lax.Precision.HIGHEST

    def conv3x3(a, w, b):
        ap = jnp.pad(a, ((0, 0), (1, 1), (1, 1), (0, 0)))
        out = jnp.zeros((N, H, W, w.shape[0]), jnp.float32)
        for i in range(3):
            for j in range(3):
                out = out + jnp.einsum("nhwc,oc->nhwo",
                                       ap[:, i:i + H, j:j + W, :],
                                       w[:, :, i, j], precision=hp)
        return out + b.reshape(1, 1, 1, -1)

    def bn(a, g, bt):
        mu = jnp.mean(a, axis=(0, 1, 2), keepdims=True)
        var = jnp.mean((a - mu) ** 2, axis=(0, 1, 2), keepdims=True)
        return (a - mu) / jnp.sqrt(var + EPS) * g.reshape(1, 1, 1, -1) + bt.reshape(1, 1, 1, -1)

    a = jnp.maximum(bn(conv3x3(x, conv_w[0], conv_b[0]), bn_gamma[0], bn_beta[0]), 0.0)
    y1 = jnp.maximum(bn(conv3x3(a, conv_w[1], conv_b[1]), bn_gamma[1], bn_beta[1]) + x, 0.0)
    a = jnp.maximum(bn(conv3x3(y1, conv_w[2], conv_b[2]), bn_gamma[2], bn_beta[2]), 0.0)
    y2 = jnp.maximum(bn(conv3x3(a, conv_w[3], conv_b[3]), bn_gamma[3], bn_beta[3]) + y1, 0.0)
    return jnp.transpose(y2, (0, 3, 1, 2))


if __name__ == "__main__":
    key = jax.random.PRNGKey(0)
    kx, kw, kb = jax.random.split(key, 3)

    # inplanes == planes == 8 (downsample=None => identity residual must match)
    N, C, H, W = 2, 8, 16, 16
    x = jax.random.normal(kx, (N, C, H, W), jnp.float32)

    # Torch-layout conv weights (cout, cin, kh, kw) and biases; BN at init.
    conv_w = jax.random.normal(kw, (4, C, C, 3, 3), jnp.float32) * (1.0 / (3.0 * (C ** 0.5)))
    conv_b = jax.random.normal(kb, (4, C), jnp.float32) * 0.1
    bn_gamma = jnp.ones((4, C), jnp.float32)
    bn_beta = jnp.zeros((4, C), jnp.float32)

    out = double_basic_block(x, conv_w, conv_b, bn_gamma, bn_beta)
    out = jax.block_until_ready(out)

    ref = _ref_forward(x, conv_w, conv_b, bn_gamma, bn_beta)
    assert out.shape == (N, C, H, W)
    max_err = float(jnp.max(jnp.abs(out - ref)))
    # Tolerance covers bf16 MXU operands (vs the HIGHEST-precision f32 XLA
    # reference) compounded over four convs + BNs; BN re-normalization keeps it
    # bounded.  A genuine layout / indexing / halo bug produces O(1) errors,
    # which this still catches.
    if not jnp.allclose(out, ref, atol=5e-2, rtol=5e-2):
        raise AssertionError(f"Pallas output mismatch vs JAX reference, max err {max_err:e}")

    print("KERNEL_OK")
</pallas_src>

<mosaic_0001>
module attributes {stable_mosaic.version = 11 : i64} {
  func.func @_dbb_kernel(%arg0: memref<32x128xf32, #tpu.memory_space<vmem>>, %arg1: memref<4x384x128xbf16, #tpu.memory_space<vmem>>, %arg2: memref<4x1x128xf32, #tpu.memory_space<vmem>>, %arg3: memref<4x1x128xf32, #tpu.memory_space<vmem>>, %arg4: memref<4x1x128xf32, #tpu.memory_space<vmem>>, %arg5: memref<32x128xf32, #tpu.memory_space<vmem>>) attributes {dimension_semantics = [], scalar_prefetch = 0 : i64, scratch_operands = 0 : i64, tpu.core_type = #tpu.core_type<tc>} {
    %0 = tpu.iota {dimensions = array<i32: 0>} : vector<32x128xi32>
    %c16_i32 = arith.constant 16 : i32
    %c0_i32 = arith.constant 0 : i32
    %1 = arith.cmpi eq, %c16_i32, %c0_i32 : i32
    %c1_i32 = arith.constant 1 : i32
    %2 = arith.select %1, %c1_i32, %c16_i32 : i32
    %3 = vector.broadcast %2 : i32 to vector<32x128xi32>
    %4 = arith.remsi %0, %3 : vector<32x128xi32>
    %c0_i32_0 = arith.constant 0 : i32
    %5 = vector.broadcast %c0_i32_0 : i32 to vector<32x128xi32>
    %6 = arith.cmpi ne, %4, %5 : vector<32x128xi32>
    %c0_i32_1 = arith.constant 0 : i32
    %7 = vector.broadcast %c0_i32_1 : i32 to vector<32x128xi32>
    %8 = arith.cmpi slt, %4, %7 : vector<32x128xi32>
    %c0_i32_2 = arith.constant 0 : i32
    %9 = arith.cmpi slt, %2, %c0_i32_2 : i32
    %10 = vector.broadcast %9 : i1 to vector<32x128xi1>
    %11 = vector.broadcast %10 : vector<32x128xi1> to vector<32x128xi1>
    %12 = arith.xori %8, %11 : vector<32x128xi1>
    %13 = arith.andi %12, %6 : vector<32x128xi1>
    %14 = vector.broadcast %2 : i32 to vector<32x128xi32>
    %15 = arith.addi %4, %14 : vector<32x128xi32>
    %16 = arith.select %13, %15, %4 : vector<32x128xi1>, vector<32x128xi32>
    %c0_i32_3 = arith.constant 0 : i32
    %17 = vector.broadcast %c0_i32_3 : i32 to vector<32x128xi32>
    %18 = arith.cmpi eq, %16, %17 : vector<32x128xi32>
    %c15_i32 = arith.constant 15 : i32
    %19 = vector.broadcast %c15_i32 : i32 to vector<32x128xi32>
    %20 = arith.cmpi eq, %16, %19 : vector<32x128xi32>
    %c0 = arith.constant 0 : index
    %c0_4 = arith.constant 0 : index
    %21 = vector.load %arg0[%c0, %c0_4] : memref<32x128xf32, #tpu.memory_space<vmem>>, vector<32x128xf32>
    %c1_i32_5 = arith.constant 1 : i32
    %22 = tpu.dynamic_rotate %21 by %c1_i32_5 dim 0 : vector<32x128xf32>, i32 -> vector<32x128xf32>
    %cst = arith.constant 0.000000e+00 : f32
    %23 = vector.broadcast %cst : f32 to vector<32x128xf32>
    %24 = arith.select %18, %23, %22 : vector<32x128xi1>, vector<32x128xf32>
    %c31_i32 = arith.constant 31 : i32
    %25 = tpu.dynamic_rotate %21 by %c31_i32 dim 0 : vector<32x128xf32>, i32 -> vector<32x128xf32>
    %cst_6 = arith.constant 0.000000e+00 : f32
    %26 = vector.broadcast %cst_6 : f32 to vector<32x128xf32>
    %27 = arith.select %20, %26, %25 : vector<32x128xi1>, vector<32x128xf32>
    %28 = tpu.concatenate %24, %21, %27 in 1 : vector<32x128xf32>, vector<32x128xf32>, vector<32x128xf32> -> vector<32x384xf32>
    %29 = arith.truncf %28 : vector<32x384xf32> to vector<32x384xbf16>
    %c0_7 = arith.constant 0 : index
    %c0_8 = arith.constant 0 : index
    %c0_9 = arith.constant 0 : index
    %30 = vector.load %arg1[%c0_7, %c0_8, %c0_9] : memref<4x384x128xbf16, #tpu.memory_space<vmem>>, vector<1x384x128xbf16>
    %31 = vector.shape_cast %30 : vector<1x384x128xbf16> to vector<384x128xbf16>
    %cst_10 = arith.constant dense<0.000000e+00> : vector<32x128xf32>
    %32 = tpu.matmul %29, %31, %cst_10 {dimension_numbers = #tpu.dot_dimension_numbers<[1], [0], [0], [1], [0, 0, 1, 1], [], []>} : vector<32x384xbf16>, vector<384x128xbf16>, vector<32x128xf32> -> vector<32x128xf32>
    %c0_11 = arith.constant 0 : index
    %c0_12 = arith.constant 0 : index
    %c0_13 = arith.constant 0 : index
    %33 = vector.load %arg2[%c0_11, %c0_12, %c0_13] : memref<4x1x128xf32, #tpu.memory_space<vmem>>, vector<1x1x128xf32>
    %34 = vector.shape_cast %33 : vector<1x1x128xf32> to vector<1x128xf32>
    %35 = vector.broadcast %34 : vector<1x128xf32> to vector<32x128xf32>
    %36 = arith.addf %32, %35 : vector<32x128xf32>
    %37 = vector.shape_cast %36 : vector<32x128xf32> to vector<4x8x128xf32>
    %cst_14 = arith.constant dense<0.000000e+00> : vector<8x128xf32>
    %38 = vector.multi_reduction <add>, %37, %cst_14 [0] : vector<4x8x128xf32> to vector<8x128xf32>
    %c8_i32 = arith.constant 8 : i32
    %39 = tpu.dynamic_rotate %38 by %c8_i32 dim 1 : vector<8x128xf32>, i32 -> vector<8x128xf32>
    %40 = arith.addf %38, %39 : vector<8x128xf32>
    %c16_i32_15 = arith.constant 16 : i32
    %41 = tpu.dynamic_rotate %40 by %c16_i32_15 dim 1 : vector<8x128xf32>, i32 -> vector<8x128xf32>
    %42 = arith.addf %40, %41 : vector<8x128xf32>
    %c32_i32 = arith.constant 32 : i32
    %43 = tpu.dynamic_rotate %42 by %c32_i32 dim 1 : vector<8x128xf32>, i32 -> vector<8x128xf32>
    %44 = arith.addf %42, %43 : vector<8x128xf32>
    %c64_i32 = arith.constant 64 : i32
    %45 = tpu.dynamic_rotate %44 by %c64_i32 dim 1 : vector<8x128xf32>, i32 -> vector<8x128xf32>
    %46 = arith.addf %44, %45 : vector<8x128xf32>
    %cst_16 = arith.constant dense<0.000000e+00> : vector<128xf32>
    %47 = vector.multi_reduction <add>, %46, %cst_16 [0] : vector<8x128xf32> to vector<128xf32>
    %48 = vector.shape_cast %47 : vector<128xf32> to vector<1x128xf32>
    %cst_17 = arith.constant 0.001953125 : f32
    %49 = vector.broadcast %cst_17 : f32 to vector<1x128xf32>
    %50 = arith.mulf %48, %49 : vector<1x128xf32>
    %51 = vector.broadcast %50 : vector<1x128xf32> to vector<32x128xf32>
    %52 = arith.subf %36, %51 : vector<32x128xf32>
    %53 = arith.mulf %52, %52 : vector<32x128xf32>
    %54 = vector.shape_cast %53 : vector<32x128xf32> to vector<4x8x128xf32>
    %cst_18 = arith.constant dense<0.000000e+00> : vector<8x128xf32>
    %55 = vector.multi_reduction <add>, %54, %cst_18 [0] : vector<4x8x128xf32> to vector<8x128xf32>
    %c8_i32_19 = arith.constant 8 : i32
    %56 = tpu.dynamic_rotate %55 by %c8_i32_19 dim 1 : vector<8x128xf32>, i32 -> vector<8x128xf32>
    %57 = arith.addf %55, %56 : vector<8x128xf32>
    %c16_i32_20 = arith.constant 16 : i32
    %58 = tpu.dynamic_rotate %57 by %c16_i32_20 dim 1 : vector<8x128xf32>, i32 -> vector<8x128xf32>
    %59 = arith.addf %57, %58 : vector<8x128xf32>
    %c32_i32_21 = arith.constant 32 : i32
    %60 = tpu.dynamic_rotate %59 by %c32_i32_21 dim 1 : vector<8x128xf32>, i32 -> vector<8x128xf32>
    %61 = arith.addf %59, %60 : vector<8x128xf32>
    %c64_i32_22 = arith.constant 64 : i32
    %62 = tpu.dynamic_rotate %61 by %c64_i32_22 dim 1 : vector<8x128xf32>, i32 -> vector<8x128xf32>
    %63 = arith.addf %61, %62 : vector<8x128xf32>
    %cst_23 = arith.constant dense<0.000000e+00> : vector<128xf32>
    %64 = vector.multi_reduction <add>, %63, %cst_23 [0] : vector<8x128xf32> to vector<128xf32>
    %65 = vector.shape_cast %64 : vector<128xf32> to vector<1x128xf32>
    %cst_24 = arith.constant 0.001953125 : f32
    %66 = vector.broadcast %cst_24 : f32 to vector<1x128xf32>
    %67 = arith.mulf %65, %66 : vector<1x128xf32>
    %cst_25 = arith.constant 9.99999974E-6 : f32
    %68 = vector.broadcast %cst_25 : f32 to vector<1x128xf32>
    %69 = arith.addf %67, %68 : vector<1x128xf32>
    %70 = math.rsqrt %69 : vector<1x128xf32>
    %71 = vector.broadcast %70 : vector<1x128xf32> to vector<32x128xf32>
    %72 = arith.mulf %52, %71 : vector<32x128xf32>
    %c0_26 = arith.constant 0 : index
    %c0_27 = arith.constant 0 : index
    %c0_28 = arith.constant 0 : index
    %73 = vector.load %arg3[%c0_26, %c0_27, %c0_28] : memref<4x1x128xf32, #tpu.memory_space<vmem>>, vector<1x1x128xf32>
    %74 = vector.shape_cast %73 : vector<1x1x128xf32> to vector<1x128xf32>
    %75 = vector.broadcast %74 : vector<1x128xf32> to vector<32x128xf32>
    %76 = arith.mulf %72, %75 : vector<32x128xf32>
    %c0_29 = arith.constant 0 : index
    %c0_30 = arith.constant 0 : index
    %c0_31 = arith.constant 0 : index
    %77 = vector.load %arg4[%c0_29, %c0_30, %c0_31] : memref<4x1x128xf32, #tpu.memory_space<vmem>>, vector<1x1x128xf32>
    %78 = vector.shape_cast %77 : vector<1x1x128xf32> to vector<1x128xf32>
    %79 = vector.broadcast %78 : vector<1x128xf32> to vector<32x128xf32>
    %80 = arith.addf %76, %79 : vector<32x128xf32>
    %cst_32 = arith.constant 0.000000e+00 : f32
    %81 = vector.broadcast %cst_32 : f32 to vector<32x128xf32>
    %82 = arith.maximumf %80, %81 : vector<32x128xf32>
    %c1_i32_33 = arith.constant 1 : i32
    %83 = tpu.dynamic_rotate %82 by %c1_i32_33 dim 0 : vector<32x128xf32>, i32 -> vector<32x128xf32>
    %cst_34 = arith.constant 0.000000e+00 : f32
    %84 = vector.broadcast %cst_34 : f32 to vector<32x128xf32>
    %85 = arith.select %18, %84, %83 : vector<32x128xi1>, vector<32x128xf32>
    %c31_i32_35 = arith.constant 31 : i32
    %86 = tpu.dynamic_rotate %82 by %c31_i32_35 dim 0 : vector<32x128xf32>, i32 -> vector<32x128xf32>
    %cst_36 = arith.constant 0.000000e+00 : f32
    %87 = vector.broadcast %cst_36 : f32 to vector<32x128xf32>
    %88 = arith.select %20, %87, %86 : vector<32x128xi1>, vector<32x128xf32>
    %89 = tpu.concatenate %85, %82, %88 in 1 : vector<32x128xf32>, vector<32x128xf32>, vector<32x128xf32> -> vector<32x384xf32>
    %90 = arith.truncf %89 : vector<32x384xf32> to vector<32x384xbf16>
    %c1 = arith.constant 1 : index
    %c0_37 = arith.constant 0 : index
    %c0_38 = arith.constant 0 : index
    %91 = vector.load %arg1[%c1, %c0_37, %c0_38] : memref<4x384x128xbf16, #tpu.memory_space<vmem>>, vector<1x384x128xbf16>
    %92 = vector.shape_cast %91 : vector<1x384x128xbf16> to vector<384x128xbf16>
    %cst_39 = arith.constant dense<0.000000e+00> : vector<32x128xf32>
    %93 = tpu.matmul %90, %92, %cst_39 {dimension_numbers = #tpu.dot_dimension_numbers<[1], [0], [0], [1], [0, 0, 1, 1], [], []>} : vector<32x384xbf16>, vector<384x128xbf16>, vector<32x128xf32> -> vector<32x128xf32>
    %c1_40 = arith.constant 1 : index
    %c0_41 = arith.constant 0 : index
    %c0_42 = arith.constant 0 : index
    %94 = vector.load %arg2[%c1_40, %c0_41, %c0_42] : memref<4x1x128xf32, #tpu.memory_space<vmem>>, vector<1x1x128xf32>
    %95 = vector.shape_cast %94 : vector<1x1x128xf32> to vector<1x128xf32>
    %96 = vector.broadcast %95 : vector<1x128xf32> to vector<32x128xf32>
    %97 = arith.addf %93, %96 : vector<32x128xf32>
    %98 = vector.shape_cast %97 : vector<32x128xf32> to vector<4x8x128xf32>
    %cst_43 = arith.constant dense<0.000000e+00> : vector<8x128xf32>
    %99 = vector.multi_reduction <add>, %98, %cst_43 [0] : vector<4x8x128xf32> to vector<8x128xf32>
    %c8_i32_44 = arith.constant 8 : i32
    %100 = tpu.dynamic_rotate %99 by %c8_i32_44 dim 1 : vector<8x128xf32>, i32 -> vector<8x128xf32>
    %101 = arith.addf %99, %100 : vector<8x128xf32>
    %c16_i32_45 = arith.constant 16 : i32
    %102 = tpu.dynamic_rotate %101 by %c16_i32_45 dim 1 : vector<8x128xf32>, i32 -> vector<8x128xf32>
    %103 = arith.addf %101, %102 : vector<8x128xf32>
    %c32_i32_46 = arith.constant 32 : i32
    %104 = tpu.dynamic_rotate %103 by %c32_i32_46 dim 1 : vector<8x128xf32>, i32 -> vector<8x128xf32>
    %105 = arith.addf %103, %104 : vector<8x128xf32>
    %c64_i32_47 = arith.constant 64 : i32
    %106 = tpu.dynamic_rotate %105 by %c64_i32_47 dim 1 : vector<8x128xf32>, i32 -> vector<8x128xf32>
    %107 = arith.addf %105, %106 : vector<8x128xf32>
    %cst_48 = arith.constant dense<0.000000e+00> : vector<128xf32>
    %108 = vector.multi_reduction <add>, %107, %cst_48 [0] : vector<8x128xf32> to vector<128xf32>
    %109 = vector.shape_cast %108 : vector<128xf32> to vector<1x128xf32>
    %cst_49 = arith.constant 0.001953125 : f32
    %110 = vector.broadcast %cst_49 : f32 to vector<1x128xf32>
    %111 = arith.mulf %109, %110 : vector<1x128xf32>
    %112 = vector.broadcast %111 : vector<1x128xf32> to vector<32x128xf32>
    %113 = arith.subf %97, %112 : vector<32x128xf32>
    %114 = arith.mulf %113, %113 : vector<32x128xf32>
    %115 = vector.shape_cast %114 : vector<32x128xf32> to vector<4x8x128xf32>
    %cst_50 = arith.constant dense<0.000000e+00> : vector<8x128xf32>
    %116 = vector.multi_reduction <add>, %115, %cst_50 [0] : vector<4x8x128xf32> to vector<8x128xf32>
    %c8_i32_51 = arith.constant 8 : i32
    %117 = tpu.dynamic_rotate %116 by %c8_i32_51 dim 1 : vector<8x128xf32>, i32 -> vector<8x128xf32>
    %118 = arith.addf %116, %117 : vector<8x128xf32>
    %c16_i32_52 = arith.constant 16 : i32
    %119 = tpu.dynamic_rotate %118 by %c16_i32_52 dim 1 : vector<8x128xf32>, i32 -> vector<8x128xf32>
    %120 = arith.addf %118, %119 : vector<8x128xf32>
    %c32_i32_53 = arith.constant 32 : i32
    %121 = tpu.dynamic_rotate %120 by %c32_i32_53 dim 1 : vector<8x128xf32>, i32 -> vector<8x128xf32>
    %122 = arith.addf %120, %121 : vector<8x128xf32>
    %c64_i32_54 = arith.constant 64 : i32
    %123 = tpu.dynamic_rotate %122 by %c64_i32_54 dim 1 : vector<8x128xf32>, i32 -> vector<8x128xf32>
    %124 = arith.addf %122, %123 : vector<8x128xf32>
    %cst_55 = arith.constant dense<0.000000e+00> : vector<128xf32>
    %125 = vector.multi_reduction <add>, %124, %cst_55 [0] : vector<8x128xf32> to vector<128xf32>
    %126 = vector.shape_cast %125 : vector<128xf32> to vector<1x128xf32>
    %cst_56 = arith.constant 0.001953125 : f32
    %127 = vector.broadcast %cst_56 : f32 to vector<1x128xf32>
    %128 = arith.mulf %126, %127 : vector<1x128xf32>
    %cst_57 = arith.constant 9.99999974E-6 : f32
    %129 = vector.broadcast %cst_57 : f32 to vector<1x128xf32>
    %130 = arith.addf %128, %129 : vector<1x128xf32>
    %131 = math.rsqrt %130 : vector<1x128xf32>
    %132 = vector.broadcast %131 : vector<1x128xf32> to vector<32x128xf32>
    %133 = arith.mulf %113, %132 : vector<32x128xf32>
    %c1_58 = arith.constant 1 : index
    %c0_59 = arith.constant 0 : index
    %c0_60 = arith.constant 0 : index
    %134 = vector.load %arg3[%c1_58, %c0_59, %c0_60] : memref<4x1x128xf32, #tpu.memory_space<vmem>>, vector<1x1x128xf32>
    %135 = vector.shape_cast %134 : vector<1x1x128xf32> to vector<1x128xf32>
    %136 = vector.broadcast %135 : vector<1x128xf32> to vector<32x128xf32>
    %137 = arith.mulf %133, %136 : vector<32x128xf32>
    %c1_61 = arith.constant 1 : index
    %c0_62 = arith.constant 0 : index
    %c0_63 = arith.constant 0 : index
    %138 = vector.load %arg4[%c1_61, %c0_62, %c0_63] : memref<4x1x128xf32, #tpu.memory_space<vmem>>, vector<1x1x128xf32>
    %139 = vector.shape_cast %138 : vector<1x1x128xf32> to vector<1x128xf32>
    %140 = vector.broadcast %139 : vector<1x128xf32> to vector<32x128xf32>
    %141 = arith.addf %137, %140 : vector<32x128xf32>
    %142 = arith.addf %141, %21 : vector<32x128xf32>
    %cst_64 = arith.constant 0.000000e+00 : f32
    %143 = vector.broadcast %cst_64 : f32 to vector<32x128xf32>
    %144 = arith.maximumf %142, %143 : vector<32x128xf32>
    %c1_i32_65 = arith.constant 1 : i32
    %145 = tpu.dynamic_rotate %144 by %c1_i32_65 dim 0 : vector<32x128xf32>, i32 -> vector<32x128xf32>
    %cst_66 = arith.constant 0.000000e+00 : f32
    %146 = vector.broadcast %cst_66 : f32 to vector<32x128xf32>
    %147 = arith.select %18, %146, %145 : vector<32x128xi1>, vector<32x128xf32>
    %c31_i32_67 = arith.constant 31 : i32
    %148 = tpu.dynamic_rotate %144 by %c31_i32_67 dim 0 : vector<32x128xf32>, i32 -> vector<32x128xf32>
    %cst_68 = arith.constant 0.000000e+00 : f32
    %149 = vector.broadcast %cst_68 : f32 to vector<32x128xf32>
    %150 = arith.select %20, %149, %148 : vector<32x128xi1>, vector<32x128xf32>
    %151 = tpu.concatenate %147, %144, %150 in 1 : vector<32x128xf32>, vector<32x128xf32>, vector<32x128xf32> -> vector<32x384xf32>
    %152 = arith.truncf %151 : vector<32x384xf32> to vector<32x384xbf16>
    %c2 = arith.constant 2 : index
    %c0_69 = arith.constant 0 : index
    %c0_70 = arith.constant 0 : index
    %153 = vector.load %arg1[%c2, %c0_69, %c0_70] : memref<4x384x128xbf16, #tpu.memory_space<vmem>>, vector<1x384x128xbf16>
    %154 = vector.shape_cast %153 : vector<1x384x128xbf16> to vector<384x128xbf16>
    %cst_71 = arith.constant dense<0.000000e+00> : vector<32x128xf32>
    %155 = tpu.matmul %152, %154, %cst_71 {dimension_numbers = #tpu.dot_dimension_numbers<[1], [0], [0], [1], [0, 0, 1, 1], [], []>} : vector<32x384xbf16>, vector<384x128xbf16>, vector<32x128xf32> -> vector<32x128xf32>
    %c2_72 = arith.constant 2 : index
    %c0_73 = arith.constant 0 : index
    %c0_74 = arith.constant 0 : index
    %156 = vector.load %arg2[%c2_72, %c0_73, %c0_74] : memref<4x1x128xf32, #tpu.memory_space<vmem>>, vector<1x1x128xf32>
    %157 = vector.shape_cast %156 : vector<1x1x128xf32> to vector<1x128xf32>
    %158 = vector.broadcast %157 : vector<1x128xf32> to vector<32x128xf32>
    %159 = arith.addf %155, %158 : vector<32x128xf32>
    %160 = vector.shape_cast %159 : vector<32x128xf32> to vector<4x8x128xf32>
    %cst_75 = arith.constant dense<0.000000e+00> : vector<8x128xf32>
    %161 = vector.multi_reduction <add>, %160, %cst_75 [0] : vector<4x8x128xf32> to vector<8x128xf32>
    %c8_i32_76 = arith.constant 8 : i32
    %162 = tpu.dynamic_rotate %161 by %c8_i32_76 dim 1 : vector<8x128xf32>, i32 -> vector<8x128xf32>
    %163 = arith.addf %161, %162 : vector<8x128xf32>
    %c16_i32_77 = arith.constant 16 : i32
    %164 = tpu.dynamic_rotate %163 by %c16_i32_77 dim 1 : vector<8x128xf32>, i32 -> vector<8x128xf32>
    %165 = arith.addf %163, %164 : vector<8x128xf32>
    %c32_i32_78 = arith.constant 32 : i32
    %166 = tpu.dynamic_rotate %165 by %c32_i32_78 dim 1 : vector<8x128xf32>, i32 -> vector<8x128xf32>
    %167 = arith.addf %165, %166 : vector<8x128xf32>
    %c64_i32_79 = arith.constant 64 : i32
    %168 = tpu.dynamic_rotate %167 by %c64_i32_79 dim 1 : vector<8x128xf32>, i32 -> vector<8x128xf32>
    %169 = arith.addf %167, %168 : vector<8x128xf32>
    %cst_80 = arith.constant dense<0.000000e+00> : vector<128xf32>
    %170 = vector.multi_reduction <add>, %169, %cst_80 [0] : vector<8x128xf32> to vector<128xf32>
    %171 = vector.shape_cast %170 : vector<128xf32> to vector<1x128xf32>
    %cst_81 = arith.constant 0.001953125 : f32
    %172 = vector.broadcast %cst_81 : f32 to vector<1x128xf32>
    %173 = arith.mulf %171, %172 : vector<1x128xf32>
    %174 = vector.broadcast %173 : vector<1x128xf32> to vector<32x128xf32>
    %175 = arith.subf %159, %174 : vector<32x128xf32>
    %176 = arith.mulf %175, %175 : vector<32x128xf32>
    %177 = vector.shape_cast %176 : vector<32x128xf32> to vector<4x8x128xf32>
    %cst_82 = arith.constant dense<0.000000e+00> : vector<8x128xf32>
    %178 = vector.multi_reduction <add>, %177, %cst_82 [0] : vector<4x8x128xf32> to vector<8x128xf32>
    %c8_i32_83 = arith.constant 8 : i32
    %179 = tpu.dynamic_rotate %178 by %c8_i32_83 dim 1 : vector<8x128xf32>, i32 -> vector<8x128xf32>
    %180 = arith.addf %178, %179 : vector<8x128xf32>
    %c16_i32_84 = arith.constant 16 : i32
    %181 = tpu.dynamic_rotate %180 by %c16_i32_84 dim 1 : vector<8x128xf32>, i32 -> vector<8x128xf32>
    %182 = arith.addf %180, %181 : vector<8x128xf32>
    %c32_i32_85 = arith.constant 32 : i32
    %183 = tpu.dynamic_rotate %182 by %c32_i32_85 dim 1 : vector<8x128xf32>, i32 -> vector<8x128xf32>
    %184 = arith.addf %182, %183 : vector<8x128xf32>
    %c64_i32_86 = arith.constant 64 : i32
    %185 = tpu.dynamic_rotate %184 by %c64_i32_86 dim 1 : vector<8x128xf32>, i32 -> vector<8x128xf32>
    %186 = arith.addf %184, %185 : vector<8x128xf32>
    %cst_87 = arith.constant dense<0.000000e+00> : vector<128xf32>
    %187 = vector.multi_reduction <add>, %186, %cst_87 [0] : vector<8x128xf32> to vector<128xf32>
    %188 = vector.shape_cast %187 : vector<128xf32> to vector<1x128xf32>
    %cst_88 = arith.constant 0.001953125 : f32
    %189 = vector.broadcast %cst_88 : f32 to vector<1x128xf32>
    %190 = arith.mulf %188, %189 : vector<1x128xf32>
    %cst_89 = arith.constant 9.99999974E-6 : f32
    %191 = vector.broadcast %cst_89 : f32 to vector<1x128xf32>
    %192 = arith.addf %190, %191 : vector<1x128xf32>
    %193 = math.rsqrt %192 : vector<1x128xf32>
    %194 = vector.broadcast %193 : vector<1x128xf32> to vector<32x128xf32>
    %195 = arith.mulf %175, %194 : vector<32x128xf32>
    %c2_90 = arith.constant 2 : index
    %c0_91 = arith.constant 0 : index
    %c0_92 = arith.constant 0 : index
    %196 = vector.load %arg3[%c2_90, %c0_91, %c0_92] : memref<4x1x128xf32, #tpu.memory_space<vmem>>, vector<1x1x128xf32>
    %197 = vector.shape_cast %196 : vector<1x1x128xf32> to vector<1x128xf32>
    %198 = vector.broadcast %197 : vector<1x128xf32> to vector<32x128xf32>
    %199 = arith.mulf %195, %198 : vector<32x128xf32>
    %c2_93 = arith.constant 2 : index
    %c0_94 = arith.constant 0 : index
    %c0_95 = arith.constant 0 : index
    %200 = vector.load %arg4[%c2_93, %c0_94, %c0_95] : memref<4x1x128xf32, #tpu.memory_space<vmem>>, vector<1x1x128xf32>
    %201 = vector.shape_cast %200 : vector<1x1x128xf32> to vector<1x128xf32>
    %202 = vector.broadcast %201 : vector<1x128xf32> to vector<32x128xf32>
    %203 = arith.addf %199, %202 : vector<32x128xf32>
    %cst_96 = arith.constant 0.000000e+00 : f32
    %204 = vector.broadcast %cst_96 : f32 to vector<32x128xf32>
    %205 = arith.maximumf %203, %204 : vector<32x128xf32>
    %c1_i32_97 = arith.constant 1 : i32
    %206 = tpu.dynamic_rotate %205 by %c1_i32_97 dim 0 : vector<32x128xf32>, i32 -> vector<32x128xf32>
    %cst_98 = arith.constant 0.000000e+00 : f32
    %207 = vector.broadcast %cst_98 : f32 to vector<32x128xf32>
    %208 = arith.select %18, %207, %206 : vector<32x128xi1>, vector<32x128xf32>
    %c31_i32_99 = arith.constant 31 : i32
    %209 = tpu.dynamic_rotate %205 by %c31_i32_99 dim 0 : vector<32x128xf32>, i32 -> vector<32x128xf32>
    %cst_100 = arith.constant 0.000000e+00 : f32
    %210 = vector.broadcast %cst_100 : f32 to vector<32x128xf32>
    %211 = arith.select %20, %210, %209 : vector<32x128xi1>, vector<32x128xf32>
    %212 = tpu.concatenate %208, %205, %211 in 1 : vector<32x128xf32>, vector<32x128xf32>, vector<32x128xf32> -> vector<32x384xf32>
    %213 = arith.truncf %212 : vector<32x384xf32> to vector<32x384xbf16>
    %c3 = arith.constant 3 : index
    %c0_101 = arith.constant 0 : index
    %c0_102 = arith.constant 0 : index
    %214 = vector.load %arg1[%c3, %c0_101, %c0_102] : memref<4x384x128xbf16, #tpu.memory_space<vmem>>, vector<1x384x128xbf16>
    %215 = vector.shape_cast %214 : vector<1x384x128xbf16> to vector<384x128xbf16>
    %cst_103 = arith.constant dense<0.000000e+00> : vector<32x128xf32>
    %216 = tpu.matmul %213, %215, %cst_103 {dimension_numbers = #tpu.dot_dimension_numbers<[1], [0], [0], [1], [0, 0, 1, 1], [], []>} : vector<32x384xbf16>, vector<384x128xbf16>, vector<32x128xf32> -> vector<32x128xf32>
    %c3_104 = arith.constant 3 : index
    %c0_105 = arith.constant 0 : index
    %c0_106 = arith.constant 0 : index
    %217 = vector.load %arg2[%c3_104, %c0_105, %c0_106] : memref<4x1x128xf32, #tpu.memory_space<vmem>>, vector<1x1x128xf32>
    %218 = vector.shape_cast %217 : vector<1x1x128xf32> to vector<1x128xf32>
    %219 = vector.broadcast %218 : vector<1x128xf32> to vector<32x128xf32>
    %220 = arith.addf %216, %219 : vector<32x128xf32>
    %221 = vector.shape_cast %220 : vector<32x128xf32> to vector<4x8x128xf32>
    %cst_107 = arith.constant dense<0.000000e+00> : vector<8x128xf32>
    %222 = vector.multi_reduction <add>, %221, %cst_107 [0] : vector<4x8x128xf32> to vector<8x128xf32>
    %c8_i32_108 = arith.constant 8 : i32
    %223 = tpu.dynamic_rotate %222 by %c8_i32_108 dim 1 : vector<8x128xf32>, i32 -> vector<8x128xf32>
    %224 = arith.addf %222, %223 : vector<8x128xf32>
    %c16_i32_109 = arith.constant 16 : i32
    %225 = tpu.dynamic_rotate %224 by %c16_i32_109 dim 1 : vector<8x128xf32>, i32 -> vector<8x128xf32>
    %226 = arith.addf %224, %225 : vector<8x128xf32>
    %c32_i32_110 = arith.constant 32 : i32
    %227 = tpu.dynamic_rotate %226 by %c32_i32_110 dim 1 : vector<8x128xf32>, i32 -> vector<8x128xf32>
    %228 = arith.addf %226, %227 : vector<8x128xf32>
    %c64_i32_111 = arith.constant 64 : i32
    %229 = tpu.dynamic_rotate %228 by %c64_i32_111 dim 1 : vector<8x128xf32>, i32 -> vector<8x128xf32>
    %230 = arith.addf %228, %229 : vector<8x128xf32>
    %cst_112 = arith.constant dense<0.000000e+00> : vector<128xf32>
    %231 = vector.multi_reduction <add>, %230, %cst_112 [0] : vector<8x128xf32> to vector<128xf32>
    %232 = vector.shape_cast %231 : vector<128xf32> to vector<1x128xf32>
    %cst_113 = arith.constant 0.001953125 : f32
    %233 = vector.broadcast %cst_113 : f32 to vector<1x128xf32>
    %234 = arith.mulf %232, %233 : vector<1x128xf32>
    %235 = vector.broadcast %234 : vector<1x128xf32> to vector<32x128xf32>
    %236 = arith.subf %220, %235 : vector<32x128xf32>
    %237 = arith.mulf %236, %236 : vector<32x128xf32>
    %238 = vector.shape_cast %237 : vector<32x128xf32> to vector<4x8x128xf32>
    %cst_114 = arith.constant dense<0.000000e+00> : vector<8x128xf32>
    %239 = vector.multi_reduction <add>, %238, %cst_114 [0] : vector<4x8x128xf32> to vector<8x128xf32>
    %c8_i32_115 = arith.constant 8 : i32
    %240 = tpu.dynamic_rotate %239 by %c8_i32_115 dim 1 : vector<8x128xf32>, i32 -> vector<8x128xf32>
    %241 = arith.addf %239, %240 : vector<8x128xf32>
    %c16_i32_116 = arith.constant 16 : i32
    %242 = tpu.dynamic_rotate %241 by %c16_i32_116 dim 1 : vector<8x128xf32>, i32 -> vector<8x128xf32>
    %243 = arith.addf %241, %242 : vector<8x128xf32>
    %c32_i32_117 = arith.constant 32 : i32
    %244 = tpu.dynamic_rotate %243 by %c32_i32_117 dim 1 : vector<8x128xf32>, i32 -> vector<8x128xf32>
    %245 = arith.addf %243, %244 : vector<8x128xf32>
    %c64_i32_118 = arith.constant 64 : i32
    %246 = tpu.dynamic_rotate %245 by %c64_i32_118 dim 1 : vector<8x128xf32>, i32 -> vector<8x128xf32>
    %247 = arith.addf %245, %246 : vector<8x128xf32>
    %cst_119 = arith.constant dense<0.000000e+00> : vector<128xf32>
    %248 = vector.multi_reduction <add>, %247, %cst_119 [0] : vector<8x128xf32> to vector<128xf32>
    %249 = vector.shape_cast %248 : vector<128xf32> to vector<1x128xf32>
    %cst_120 = arith.constant 0.001953125 : f32
    %250 = vector.broadcast %cst_120 : f32 to vector<1x128xf32>
    %251 = arith.mulf %249, %250 : vector<1x128xf32>
    %cst_121 = arith.constant 9.99999974E-6 : f32
    %252 = vector.broadcast %cst_121 : f32 to vector<1x128xf32>
    %253 = arith.addf %251, %252 : vector<1x128xf32>
    %254 = math.rsqrt %253 : vector<1x128xf32>
    %255 = vector.broadcast %254 : vector<1x128xf32> to vector<32x128xf32>
    %256 = arith.mulf %236, %255 : vector<32x128xf32>
    %c3_122 = arith.constant 3 : index
    %c0_123 = arith.constant 0 : index
    %c0_124 = arith.constant 0 : index
    %257 = vector.load %arg3[%c3_122, %c0_123, %c0_124] : memref<4x1x128xf32, #tpu.memory_space<vmem>>, vector<1x1x128xf32>
    %258 = vector.shape_cast %257 : vector<1x1x128xf32> to vector<1x128xf32>
    %259 = vector.broadcast %258 : vector<1x128xf32> to vector<32x128xf32>
    %260 = arith.mulf %256, %259 : vector<32x128xf32>
    %c3_125 = arith.constant 3 : index
    %c0_126 = arith.constant 0 : index
    %c0_127 = arith.constant 0 : index
    %261 = vector.load %arg4[%c3_125, %c0_126, %c0_127] : memref<4x1x128xf32, #tpu.memory_space<vmem>>, vector<1x1x128xf32>
    %262 = vector.shape_cast %261 : vector<1x1x128xf32> to vector<1x128xf32>
    %263 = vector.broadcast %262 : vector<1x128xf32> to vector<32x128xf32>
    %264 = arith.addf %260, %263 : vector<32x128xf32>
    %265 = arith.addf %264, %144 : vector<32x128xf32>
    %cst_128 = arith.constant 0.000000e+00 : f32
    %266 = vector.broadcast %cst_128 : f32 to vector<32x128xf32>
    %267 = arith.maximumf %265, %266 : vector<32x128xf32>
    %c0_129 = arith.constant 0 : index
    %c0_130 = arith.constant 0 : index
    %268 = vector.load %arg5[%c0_129, %c0_130] : memref<32x128xf32, #tpu.memory_space<vmem>>, vector<32x128xf32>
    tpu.vector_store %arg5[%c0_129, %c0_130], %267 {strides = array<i32>} : memref<32x128xf32, #tpu.memory_space<vmem>>, vector<32x128xf32>,
    return
  }
}

</mosaic_0001>

<bundles_post_ra>
// kernel: double_basic_block.1
= control target key start
LH: loop header
LB: loop body
LE: loop exit
PB: predicated region body
PF: predicated region fallthrough
CT: control target
= control target key end

     0   :  { %v20_v12 = vlaneseq  ;;  %vm2321_vm4 = vmmov 1   ;;  %s2322_s25 = smov 8   ;;  %s2323_s26 = smov 16   ;;  %s2968_s1 = inlined_call_operand.vmem [shape: bf16[4,384,128], index: 1, kind: input, shape index: {}]   ;;  %s2969_s2 = inlined_call_operand.vmem [shape: f32[4,1,128], index: 2, kind: input, shape index: {}]   ;;  %s2970_s0 = inlined_call_operand.vmem [shape: f32[32,128], index: 0, kind: input, shape index: {}]   ;;  %s2971_s3 = inlined_call_operand.vmem [shape: f32[4,1,128], index: 3, kind: input, shape index: {}]   ;;  %s2972_s4 = inlined_call_operand.vmem [shape: f32[4,1,128], index: 4, kind: input, shape index: {}]   ;;  %s2973_s5 = inlined_call_operand.vmem [shape: f32[32,128], index: 5, kind: output, shape index: {}]  }
   0x1   :  { %v2203_v0 = vld [vmem:[%s2968_s1 + $0x38] sm:$0xff]  ;;  %v2202_v3 = vld [vmem:[%s2968_s1 + $0x30] sm:$0xff]  ;;  %v2201_v6 = vld [vmem:[%s2968_s1 + $0x28] sm:$0xff]  ;;  %s2324_s27 = smov 32   ;;  %s2325_s28 = smov 64  }
   0x2   :  { %v2211_v1 = vld [vmem:[%s2968_s1 + $0x78] sm:$0xff]  ;;  %313 = vmatpush.bf16.msra.mxu0 %v2203_v0  ;;  %v2210_v4 = vld [vmem:[%s2968_s1 + $0x70] sm:$0xff]  ;;  %v2209_v7 = vld [vmem:[%s2968_s1 + $0x68] sm:$0xff]  ;;  %v2401_v16 = vshrl.u32 %v20_v12, 7 }
   0x3   :  { %v2219_v2 = vld [vmem:[%s2968_s1 + $0xb8] sm:$0xff]  ;;  %332 = vmatpush.bf16.msra.mxu1 %v2211_v1  ;;  %v2218_v5 = vld [vmem:[%s2968_s1 + $0xb0] sm:$0xff]  ;;  %v2217_v8 = vld [vmem:[%s2968_s1 + $0xa8] sm:$0xff] }
   0x4   :  { %351 = vmatpush.bf16.msra.mxu2 %v2219_v2  ;;  %v2200_v9 = vld [vmem:[%s2968_s1 + $0x20] sm:$0xff]  ;;  %v2199_v13 = vld [vmem:[%s2968_s1 + $0x18] sm:$0xff]  ;;  %v2198_v17 = vld [vmem:[%s2968_s1 + $0x10] sm:$0xff]  ;;  %v22_v23 = vadd.s32 8, %v2401_v16  ;;  %v29_v27 = vand.u32 15, %v2401_v16  ;;  %vm89_vm0 = vcmp.lt.s32.totalorder %v2401_v16, 1 }
   0x5   :  { %v2208_v10 = vld [vmem:[%s2968_s1 + $0x60] sm:$0xff]  ;;  %v2207_v14 = vld [vmem:[%s2968_s1 + $0x58] sm:$0xff]  ;;  %v2206_v18 = vld [vmem:[%s2968_s1 + $0x50] sm:$0xff]  ;;  %vm102_vm1 = vcmp.lt.s32.totalorder %v2401_v16, 7  ;;  %v23_v48 = vadd.s32 16, %v2401_v16  ;;  %v24_v49 = vadd.s32 24, %v2401_v16 }
   0x6   :  { %314 = vmatpush.bf16.msra.mxu0 %v2202_v3  ;;  %v2216_v11 = vld [vmem:[%s2968_s1 + $0xa0] sm:$0xff]  ;;  %v2215_v15 = vld [vmem:[%s2968_s1 + $0x98] sm:$0xff]  ;;  %v2214_v19 = vld [vmem:[%s2968_s1 + $0x90] sm:$0xff]  ;;  %v36_v35 = vand.u32 15, %v22_v23  ;;  %vm2292_vm2 = vcmp.ne.s32.totalorder %v29_v27, 0 }
   0x7   :  { %333 = vmatpush.bf16.msra.mxu1 %v2210_v4  ;;  %v2415_v20 = vld [vmem:[%s2970_s0] sm:$0xff]  ;;  %v2420_v21 = vld [vmem:[%s2970_s0 + $0x8] sm:$0xff]  ;;  %v2425_v22 = vld [vmem:[%s2970_s0 + $0x18] sm:$0xff]  ;;  %v43_v51 = vand.u32 15, %v23_v48  ;;  %v50_v53 = vand.u32 15, %v24_v49 }
   0x8   :  { %352 = vmatpush.bf16.msra.mxu2 %v2218_v5  ;;  %v2431_v24 = vld [vmem:[%s2970_s0 + $0x10] sm:$0xff]  ;;  %v2197_v25 = vld [vmem:[%s2968_s1 + $0x8] sm:$0xff]  ;;  %v85_v28 = vrot.slane %v2415_v20, 7  ;;  %v86_v29 = vrot.slane %v2420_v21, 7  ;;  %v88_v30 = vrot.slane %v2425_v22, 7  ;;  %v98_v32 = vrot.slane %v2415_v20, 1  ;;  %vm2471_vm5 = vmpackc.low %vm2321_vm4, %vm2292_vm2 }
   0x9   :  { %v2205_v26 = vld [vmem:[%s2968_s1 + $0x48] sm:$0xff]  ;;  %v99_v33 = vrot.slane %v2420_v21, 1  ;;  %v100_v34 = vrot.slane %v2431_v24, 1  ;;  %v2196_v36 = vld [vmem:[%s2968_s1] sm:$0xff]  ;;  %vm2294_vm3 = vcmp.ne.s32.totalorder %v36_v35, 15  ;;  %v112_v44 = vpack.c.bf16 %v2420_v21, %v2415_v20 }
   0xa   :  { %315 = vmatpush.bf16.msra.mxu0 %v2201_v6  ;;  %v2213_v31 = vld [vmem:[%s2968_s1 + $0x88] sm:$0xff]  ;;  %v2204_v37 = vld [vmem:[%s2968_s1 + $0x40] sm:$0xff]  ;;  %v92_v38 = vsel %vm89_vm0, %v85_v28, %v86_v29  ;;  %v93_v39 = vsel %vm89_vm0, %v88_v30, %v85_v28  ;;  %vm2476_vm6 = vmpackc.low %vm2294_vm3, %vm2321_vm4  ;;  %v87_v50 = vrot.slane %v2431_v24, 7  ;;  %v101_v52 = vrot.slane %v2425_v22, 1 }
   0xb   :  { %334 = vmatpush.bf16.msra.mxu1 %v2209_v7  ;;  %v2212_v40 = vld [vmem:[%s2968_s1 + $0x80] sm:$0xff]  ;;  %v104_v41 = vsel %vm102_vm1, %v99_v33, %v100_v34  ;;  %v105_v42 = vsel %vm102_vm1, %v98_v32, %v99_v33  ;;  %v1693_v43 = vpack.c.bf16 %v92_v38, %v93_v39  ;;  %vm2293_vm7 = vcmp.ne.s32.totalorder %v43_v51, 0 }
   0xc   :  { %353 = vmatpush.bf16.msra.mxu2 %v2217_v8  ;;  %v1701_v46 = vpack.c.bf16 %v104_v41, %v105_v42  ;;  %v90_v54 = vsel %vm89_vm0, %v87_v50, %v88_v30  ;;  %v91_v55 = vsel %vm89_vm0, %v86_v29, %v87_v50  ;;  %v103_v56 = vsel %vm102_vm1, %v100_v34, %v101_v52  ;;  %vm2499_vm9 = vmpackc.low %vm2321_vm4, %vm2293_vm7  ;;  %v2301_v5 = vld [vmem:[%s2969_s2] ss:$0 sm:$0xff]  ;;  %v2312_v16 = vld [vmem:[%s2969_s2 + $0x3] ss:$0 sm:$0xff] }
   0xd   :  { %v106_v57 = vsel %vm102_vm1, %v101_v52, %v98_v32  ;;  %vm2295_vm8 = vcmp.ne.s32.totalorder %v50_v53, 15  ;;  %v1697_v58 = vpack.c.bf16 %v90_v54, %v91_v55  ;;  %v115_v59 = vpack.c.bf16 %v2425_v22, %v2431_v24 }
   0xe   :  { %316 = vmatpush.bf16.msra.mxu0 %v2200_v9  ;;  %v1705_v61 = vpack.c.bf16 %v106_v57, %v103_v56  ;;  %vm2504_vm10 = vmpackc.low %vm2295_vm8, %vm2321_vm4 }
   0xf   :  { %335 = vmatpush.bf16.msra.mxu1 %v2208_v10 }
  0x10   :  { %354 = vmatpush.bf16.msra.mxu2 %v2216_v11 }
  0x12   :  { %317 = vmatpush.bf16.msra.mxu0 %v2199_v13 }
  0x13   :  { %336 = vmatpush.bf16.msra.mxu1 %v2207_v14 }
  0x14   :  { %355 = vmatpush.bf16.msra.mxu2 %v2215_v15 }
  0x16   :  { %318 = vmatpush.bf16.msra.mxu0 %v2198_v17 }
  0x17   :  { %337 = vmatpush.bf16.msra.mxu1 %v2206_v18 }
  0x18   :  { %356 = vmatpush.bf16.msra.mxu2 %v2214_v19 }
  0x1a   :  { %319 = vmatpush.bf16.msra.mxu0 %v2197_v25 }
  0x1b   :  { %338 = vmatpush.bf16.msra.mxu1 %v2205_v26 }
  0x1c   :  { %357 = vmatpush.bf16.msra.mxu2 %v2213_v31 }
  0x1e   :  { %320 = vmatpush.bf16.msra.mxu0 %v2196_v36 }
  0x1f   :  { %339 = vmatpush.bf16.msra.mxu1 %v2204_v37 }
  0x20   :  { %358 = vmatpush.bf16.msra.mxu2 %v2212_v40 }
  0x21   :  { %1694 = vmatmul.msk.bf16.vlgmr.msra.gmra.mxu0 %vm2471_vm5, %v1693_v43 }
  0x22   :  { %340 = vmatmul.bf16.vlgmr.msra.gmra.mxu1 %v112_v44 }
  0x23   :  { %1702 = vmatmul.msk.bf16.vlgmr.msra.gmra.mxu2 %vm2476_vm6, %v1701_v46 }
  0x31   :  { %1698 = vmatmul.msk.bf16.gmra.mxu0 %vm2499_vm9, %v1697_v58 }
  0x32   :  { %345 = vmatmul.bf16.gmra.mxu1 %v115_v59 }
  0x33   :  { %1706 = vmatmul.msk.bf16.gmra.mxu2 %vm2504_vm10, %v1705_v61 }
  0x9e   :  { %v322_v63 = vpop.f32.mrf.mxu0 }
  0x9f   :  { %v341_v0 = vpop.f32.mrf.mxu1  ;;  %v323_v8 = vadd.f32 %v2301_v5, %v322_v63 }
  0xa1   :  { %v342_v12 = vadd.f32 %v341_v0, %v323_v8  ;;  %v2226_v8 = vld [vmem:[%s2968_s1 + $0xf0] sm:$0xff] }
  0xa6   :  { %v360_v1 = vpop.f32.mrf.mxu2  ;;  %v324_v2 = vpop.f32.mrf.mxu0 }
  0xa7   :  { %v343_v3 = vpop.f32.mrf.mxu1  ;;  %v325_v9 = vadd.f32 %v2301_v5, %v324_v2  ;;  %v361_v19 = vadd.f32 %v360_v1, %v342_v12  ;;  %v2241_v12 = vld [vmem:[%s2968_s1 + $0x168] sm:$0xff] }
  0xa9   :  { %v344_v13 = vadd.f32 %v343_v3, %v325_v9  ;;  %v2242_v9 = vld [vmem:[%s2968_s1 + $0x170] sm:$0xff] }
  0xae   :  { %v362_v4 = vpop.f32.mrf.mxu2  ;;  %v327_v6 = vpop.f32.mrf.mxu0 }
  0xaf   :  { %v346_v7 = vpop.f32.mrf.mxu1  ;;  %v328_v10 = vadd.f32 %v2301_v5, %v327_v6  ;;  %v363_v17 = vadd.f32 %v362_v4, %v344_v13  ;;  %v2235_v4 = vld [vmem:[%s2968_s1 + $0x138] sm:$0xff]  ;;  %v2232_v13 = vld [vmem:[%s2968_s1 + $0x120] sm:$0xff] }
  0xb0   :  { %704 = vmatpush.bf16.msrb.mxu0 %v2235_v4  ;;  %v2243_v6 = vld [vmem:[%s2968_s1 + $0x178] sm:$0xff] }
  0xb1   :  { %v347_v14 = vadd.f32 %v346_v7, %v328_v10  ;;  %v370_v26 = vadd.f32 %v363_v17, %v361_v19  ;;  %v2234_v7 = vld [vmem:[%s2968_s1 + $0x130] sm:$0xff]  ;;  %723 = vmatpush.bf16.msrb.mxu1 %v2243_v6  ;;  %v2233_v10 = vld [vmem:[%s2968_s1 + $0x128] sm:$0xff] }
  0xb4   :  { %705 = vmatpush.bf16.msrb.mxu0 %v2234_v7 }
  0xb5   :  { %724 = vmatpush.bf16.msrb.mxu1 %v2242_v9 }
  0xb6   :  { %v365_v11 = vpop.f32.mrf.mxu2  ;;  %v329_v15 = vpop.f32.mrf.mxu0 }
  0xb7   :  { %v330_v18 = vadd.f32 %v2301_v5, %v329_v15  ;;  %v366_v23 = vadd.f32 %v365_v11, %v347_v14  ;;  %v348_v25 = vpop.f32.mrf.mxu1  ;;  %v2227_v5 = vld [vmem:[%s2968_s1 + $0xf8] sm:$0xff]  ;;  %v2225_v11 = vld [vmem:[%s2968_s1 + $0xe8] sm:$0xff]  ;;  %v2224_v14 = vld [vmem:[%s2968_s1 + $0xe0] sm:$0xff] }
  0xb8   :  { %685 = vmatpush.bf16.msra.mxu3 %v2227_v5  ;;  %706 = vmatpush.bf16.msrb.mxu0 %v2233_v10  ;;  %v2240_v15 = vld [vmem:[%s2968_s1 + $0x160] sm:$0xff] }
  0xb9   :  { %v349_v27 = vadd.f32 %v348_v25, %v330_v18  ;;  %v371_v29 = vadd.f32 %v370_v26, %v366_v23  ;;  %725 = vmatpush.bf16.msrb.mxu1 %v2241_v12  ;;  %v2239_v25 = vld [vmem:[%s2968_s1 + $0x158] sm:$0xff]  ;;  %v2230_v26 = vld [vmem:[%s2968_s1 + $0x110] sm:$0xff] }
  0xbc   :  { %686 = vmatpush.bf16.msra.mxu3 %v2226_v8  ;;  %707 = vmatpush.bf16.msrb.mxu0 %v2232_v13 }
  0xbd   :  { %726 = vmatpush.bf16.msrb.mxu1 %v2240_v15 }
  0xbe   :  { %v367_v28 = vpop.f32.mrf.mxu2 }
  0xbf   :  { %v368_v30 = vadd.f32 %v367_v28, %v349_v27 }
  0xc0   :  { %687 = vmatpush.bf16.msra.mxu3 %v2225_v11 }
  0xc1   :  { %v372_v31 = vadd.f32 %v371_v29, %v368_v30  ;;  %727 = vmatpush.bf16.msrb.mxu1 %v2239_v25  ;;  %v2222_v29 = vld [vmem:[%s2968_s1 + $0xd0] sm:$0xff] }
  0xc3   :  { %373 = vrot.lane.b32.xlu0 %v372_v31, %s2322_s25 }
  0xc4   :  { %688 = vmatpush.bf16.msra.mxu3 %v2224_v14 }
 0x135   :  { %v374_v32 = vpop.permute.xlu0 %373 }
 0x136   :  { %v375_v33 = vadd.f32 %v374_v32, %v372_v31  ;;  %v2229_v31 = vld [vmem:[%s2968_s1 + $0x108] sm:$0xff] }
 0x138   :  { %376 = vrot.lane.b32.xlu0 %v375_v33, %s2323_s26 }
 0x1aa   :  { %v377_v34 = vpop.permute.xlu0 %376 }
 0x1ab   :  { %v378_v35 = vadd.f32 %v377_v34, %v375_v33  ;;  %v2221_v33 = vld [vmem:[%s2968_s1 + $0xc8] sm:$0xff] }
 0x1ac   :  { %v2237_v34 = vld [vmem:[%s2968_s1 + $0x148] sm:$0xff] }
 0x1ad   :  { %379 = vrot.lane.b32.xlu1 %v378_v35, %s2324_s27 }
 0x21f   :  { %v380_v36 = vpop.permute.xlu1 %379 }
 0x220   :  { %v381_v37 = vadd.f32 %v380_v36, %v378_v35  ;;  %v2228_v35 = vld [vmem:[%s2968_s1 + $0x100] sm:$0xff] }
 0x222   :  { %382 = vrot.lane.b32.xlu1 %v381_v37, %s2325_s28 }
 0x294   :  { %v383_v38 = vpop.permute.xlu1 %382 }
 0x295   :  { %v384_v39 = vadd.f32 %v383_v38, %v381_v37  ;;  %v2220_v38 = vld [vmem:[%s2968_s1 + $0xc0] sm:$0xff] }
 0x297   :  { %v385_v40 = vrot.slane %v384_v39, 4 }
 0x299   :  { %v386_v41 = vadd.f32 %v385_v40, %v384_v39  ;;  %v2236_v40 = vld [vmem:[%s2968_s1 + $0x140] sm:$0xff] }
 0x29b   :  { %v387_v42 = vrot.slane %v386_v41, 2 }
 0x29d   :  { %v388_v43 = vadd.f32 %v387_v42, %v386_v41 }
 0x29f   :  { %v389_v44 = vrot.slane %v388_v43, 1 }
 0x2a1   :  { %v390_v46 = vadd.f32 %v389_v44, %v388_v43 }
 0x2a3   :  { %v391_v48 = vmul.f32 0.001953125, %v390_v46 }
 0x2a5   :  { %v2519_v49 = vsub.f32 %v361_v19, %v391_v48  ;;  %v2521_v50 = vsub.f32 %v363_v17, %v391_v48  ;;  %v2523_v51 = vsub.f32 %v366_v23, %v391_v48  ;;  %v2525_v52 = vsub.f32 %v368_v30, %v391_v48  ;;  %v2231_v17 = vld [vmem:[%s2968_s1 + $0x118] sm:$0xff]  ;;  %v2238_v30 = vld [vmem:[%s2968_s1 + $0x150] sm:$0xff] }
 0x2a6   :  { %708 = vmatpush.bf16.msrb.mxu0 %v2231_v17  ;;  %v2223_v23 = vld [vmem:[%s2968_s1 + $0xd8] sm:$0xff]  ;;  %728 = vmatpush.bf16.msrb.mxu1 %v2238_v30 }
 0x2a7   :  { %v396_v53 = vmul.f32 %v2519_v49, %v2519_v49  ;;  %v397_v54 = vmul.f32 %v2521_v50, %v2521_v50  ;;  %v398_v55 = vmul.f32 %v2523_v51, %v2523_v51  ;;  %v399_v57 = vmul.f32 %v2525_v52, %v2525_v52  ;;  %689 = vmatpush.bf16.msra.mxu3 %v2223_v23 }
 0x2a9   :  { %v400_v56 = vadd.f32 %v397_v54, %v396_v53 }
 0x2aa   :  { %709 = vmatpush.bf16.msrb.mxu0 %v2230_v26  ;;  %729 = vmatpush.bf16.msrb.mxu1 %v2237_v34 }
 0x2ab   :  { %v401_v58 = vadd.f32 %v400_v56, %v398_v55  ;;  %690 = vmatpush.bf16.msra.mxu3 %v2222_v29  ;;  %v2302_v55 = vld [vmem:[%s2971_s3] ss:$0 sm:$0xff] }
 0x2ad   :  { %v402_v59 = vadd.f32 %v401_v58, %v399_v57 }
 0x2ae   :  { %710 = vmatpush.bf16.msrb.mxu0 %v2229_v31  ;;  %730 = vmatpush.bf16.msrb.mxu1 %v2236_v40 }
 0x2af   :  { %403 = vrot.lane.b32.xlu2 %v402_v59, %s2322_s25  ;;  %691 = vmatpush.bf16.msra.mxu3 %v2221_v33 }
 0x2b2   :  { %711 = vmatpush.bf16.msrb.mxu0 %v2228_v35 }
 0x2b3   :  { %692 = vmatpush.bf16.msra.mxu3 %v2220_v38 }
 0x309   :  { %v404_v61 = vpop.permute.xlu2 %403 }
 0x30a   :  { %v405_v63 = vadd.f32 %v404_v61, %v402_v59  ;;  %v2303_v61 = vld [vmem:[%s2972_s4] ss:$0 sm:$0xff] }
 0x30c   :  { %406 = vrot.lane.b32.xlu2 %v405_v63, %s2323_s26 }
 0x366   :  { %v407_v0 = vpop.permute.xlu2 %406 }
 0x367   :  { %v408_v1 = vadd.f32 %v407_v0, %v405_v63 }
 0x369   :  { %409 = vrot.lane.b32.xlu0 %v408_v1, %s2324_s27 }
 0x3db   :  { %v410_v2 = vpop.permute.xlu0 %409 }
 0x3dc   :  { %v411_v3 = vadd.f32 %v410_v2, %v408_v1 }
 0x3de   :  { %412 = vrot.lane.b32.xlu1 %v411_v3, %s2325_s28 }
 0x450   :  { %v413_v18 = vpop.permute.xlu1 %412 }
 0x451   :  { %v414_v19 = vadd.f32 %v413_v18, %v411_v3 }
 0x453   :  { %v415_v27 = vrot.slane %v414_v19, 4 }
 0x455   :  { %v416_v28 = vadd.f32 %v415_v27, %v414_v19 }
 0x457   :  { %v417_v32 = vrot.slane %v416_v28, 2 }
 0x459   :  { %v418_v36 = vadd.f32 %v417_v32, %v416_v28 }
 0x45b   :  { %v419_v37 = vrot.slane %v418_v36, 1 }
 0x45d   :  { %v420_v39 = vadd.f32 %v419_v37, %v418_v36 }
 0x45f   :  { %v421_v41 = vmul.f32 0.001953125, %v420_v39 }
 0x461   :  { %v422_v42 = vadd.f32 1e-05, %v421_v41  ;;  %v2307_v41 = vld [vmem:[%s2969_s2 + $0x1] ss:$0 sm:$0xff] }
 0x463   :  { %2313 = vrsqrt.f32 %v422_v42  ;;  %vm429_vm12 = vweird.f32 %v422_v42 }
 0x469   :  { %v2314_v43 = vpop.eup %2313 }
 0x46a   :  { %v424_v44 = vmul.f32 %v2314_v43, %v422_v42  ;;  %vm430_vm11 = vweird.f32 %v2314_v43 }
 0x46b   :  { %vm431_vm13 = vmor %vm429_vm12, %vm430_vm11 }
 0x46c   :  { %v425_v46 = vmul.f32 %v2314_v43, %v424_v44 }
 0x46e   :  { %v426_v48 = vmul.f32 0.5, %v425_v46 }
 0x470   :  { %v427_v53 = vsub.f32 1.5, %v426_v48 }
 0x472   :  { %v428_v54 = vmul.f32 %v2314_v43, %v427_v53 }
 0x474   :  { %v432_v56 = vsel %vm431_vm13, %v2314_v43, %v428_v54 }
 0x475   :  { %v435_v57 = vmul.f32 %v432_v56, %v2523_v51  ;;  %v433_v58 = vmul.f32 %v432_v56, %v2519_v49  ;;  %v434_v59 = vmul.f32 %v432_v56, %v2521_v50  ;;  %v436_v63 = vmul.f32 %v432_v56, %v2525_v52 }
 0x477   :  { %v441_v0 = vmul.f32 %v2302_v55, %v433_v58  ;;  %v442_v1 = vmul.f32 %v2302_v55, %v434_v59  ;;  %v444_v2 = vmul.f32 %v2302_v55, %v436_v63  ;;  %v443_v3 = vmul.f32 %v2302_v55, %v435_v57 }
 0x479   :  { %v449_v4 = vadd.f32 %v2303_v61, %v441_v0  ;;  %v450_v5 = vadd.f32 %v2303_v61, %v442_v1  ;;  %v452_v6 = vadd.f32 %v2303_v61, %v444_v2  ;;  %v451_v7 = vadd.f32 %v2303_v61, %v443_v3 }
 0x47b   :  { %v453_v8 = vmax.f32 %v449_v4, 0.0  ;;  %v454_v51 = vmax.f32 %v450_v5, 0.0  ;;  %v456_v9 = vmax.f32 %v452_v6, 0.0  ;;  %v455_v49 = vmax.f32 %v451_v7, 0.0 }
 0x47d   :  { %v482_v10 = vpack.c.bf16 %v454_v51, %v453_v8  ;;  %v457_v50 = vrot.slane %v453_v8, 7  ;;  %v458_v11 = vrot.slane %v454_v51, 7  ;;  %v460_v12 = vrot.slane %v456_v9, 7 }
 0x47e   :  { %v469_v13 = vrot.slane %v453_v8, 1  ;;  %v470_v14 = vrot.slane %v454_v51, 1  ;;  %v471_v15 = vrot.slane %v455_v49, 1  ;;  %v459_v26 = vrot.slane %v455_v49, 7 }
 0x47f   :  { %712 = vmatmul.bf16.vlgmr.msrb.gmra.mxu0 %v482_v10  ;;  %v463_v52 = vsel %vm89_vm0, %v457_v50, %v458_v11  ;;  %v464_v17 = vsel %vm89_vm0, %v460_v12, %v457_v50  ;;  %v472_v27 = vrot.slane %v456_v9, 1  ;;  %v485_v28 = vpack.c.bf16 %v456_v9, %v455_v49 }
 0x480   :  { %v1854_v18 = vpack.c.bf16 %v463_v52, %v464_v17  ;;  %v474_v19 = vsel %vm102_vm1, %v470_v14, %v471_v15  ;;  %v475_v23 = vsel %vm102_vm1, %v469_v13, %v470_v14  ;;  %v461_v29 = vsel %vm89_vm0, %v459_v26, %v460_v12 }
 0x481   :  { %v1862_v25 = vpack.c.bf16 %v474_v19, %v475_v23  ;;  %v462_v30 = vsel %vm89_vm0, %v458_v11, %v459_v26  ;;  %v473_v31 = vsel %vm102_vm1, %v471_v15, %v472_v27  ;;  %v476_v32 = vsel %vm102_vm1, %v472_v27, %v469_v13 }
 0x482   :  { %1855 = vmatmul.msk.bf16.vlgmr.msra.gmra.mxu3 %vm2471_vm5, %v1854_v18  ;;  %v1858_v33 = vpack.c.bf16 %v461_v29, %v462_v30  ;;  %v1866_v34 = vpack.c.bf16 %v476_v32, %v473_v31 }
 0x483   :  { %1863 = vmatmul.msk.bf16.vlgmr.msrb.gmra.mxu1 %vm2476_vm6, %v1862_v25 }
 0x48f   :  { %717 = vmatmul.bf16.gmra.mxu0 %v485_v28 }
 0x492   :  { %1859 = vmatmul.msk.bf16.gmra.mxu3 %vm2499_vm9, %v1858_v33 }
 0x493   :  { %1867 = vmatmul.msk.bf16.gmra.mxu1 %vm2504_vm10, %v1866_v34 }
 0x4fc   :  { %v713_v35 = vpop.f32.mrf.mxu0 }
 0x500   :  { %v732_v36 = vpop.f32.mrf.mxu1 }
 0x504   :  { %v715_v38 = vpop.f32.mrf.mxu0 }
 0x505   :  { %v694_v37 = vpop.f32.mrf.mxu3 }
 0x506   :  { %v695_v46 = vadd.f32 %v2307_v41, %v694_v37 }
 0x508   :  { %v734_v39 = vpop.f32.mrf.mxu1  ;;  %v714_v55 = vadd.f32 %v713_v35, %v695_v46  ;;  %v2266_v46 = vld [vmem:[%s2968_s1 + $0x230] sm:$0xff] }
 0x50a   :  { %v733_v59 = vadd.f32 %v732_v36, %v714_v55  ;;  %v2256_v55 = vld [vmem:[%s2968_s1 + $0x1e0] sm:$0xff] }
 0x50c   :  { %v718_v43 = vpop.f32.mrf.mxu0 }
 0x50d   :  { %v696_v40 = vpop.f32.mrf.mxu3 }
 0x50e   :  { %v697_v42 = vadd.f32 %v2307_v41, %v696_v40  ;;  %v2259_v40 = vld [vmem:[%s2968_s1 + $0x1f8] sm:$0xff] }
 0x50f   :  { %1082 = vmatpush.bf16.msrb.mxu3 %v2259_v40 }
 0x510   :  { %v737_v53 = vpop.f32.mrf.mxu1  ;;  %v716_v54 = vadd.f32 %v715_v38, %v697_v42  ;;  %v2267_v42 = vld [vmem:[%s2968_s1 + $0x238] sm:$0xff] }
 0x511   :  { %1101 = vmatpush.bf16.msra.mxu0 %v2267_v42 }
 0x512   :  { %v735_v57 = vadd.f32 %v734_v39, %v716_v54  ;;  %v2265_v54 = vld [vmem:[%s2968_s1 + $0x228] sm:$0xff] }
 0x514   :  { %v720_v0 = vpop.f32.mrf.mxu0  ;;  %v742_v1 = vadd.f32 %v735_v57, %v733_v59 }
 0x515   :  { %v699_v44 = vpop.f32.mrf.mxu3  ;;  %1102 = vmatpush.bf16.msra.mxu0 %v2266_v46 }
 0x516   :  { %v700_v48 = vadd.f32 %v2307_v41, %v699_v44  ;;  %v2250_v44 = vld [vmem:[%s2968_s1 + $0x1b0] sm:$0xff] }
 0x518   :  { %v719_v56 = vadd.f32 %v718_v43, %v700_v48  ;;  %v739_v3 = vpop.f32.mrf.mxu1  ;;  %v2258_v43 = vld [vmem:[%s2968_s1 + $0x1f0] sm:$0xff]  ;;  %v2257_v48 = vld [vmem:[%s2968_s1 + $0x1e8] sm:$0xff] }
 0x519   :  { %1083 = vmatpush.bf16.msrb.mxu3 %v2258_v43  ;;  %1103 = vmatpush.bf16.msra.mxu0 %v2265_v54 }
 0x51a   :  { %v738_v61 = vadd.f32 %v737_v53, %v719_v56  ;;  %v2249_v53 = vld [vmem:[%s2968_s1 + $0x1a8] sm:$0xff] }
 0x51c   :  { %v743_v5 = vadd.f32 %v742_v1, %v738_v61  ;;  %v2247_v1 = vld [vmem:[%s2968_s1 + $0x198] sm:$0xff] }
 0x51d   :  { %v701_v58 = vpop.f32.mrf.mxu3  ;;  %1084 = vmatpush.bf16.msrb.mxu3 %v2257_v48 }
 0x51e   :  { %v702_v63 = vadd.f32 %v2307_v41, %v701_v58  ;;  %v2251_v41 = vld [vmem:[%s2968_s1 + $0x1b8] sm:$0xff]  ;;  %v2248_v58 = vld [vmem:[%s2968_s1 + $0x1a0] sm:$0xff] }
 0x51f   :  { %1063 = vmatpush.bf16.msrb.mxu2 %v2251_v41 }
 0x520   :  { %v721_v2 = vadd.f32 %v720_v0, %v702_v63  ;;  %v2255_v63 = vld [vmem:[%s2968_s1 + $0x1d8] sm:$0xff] }
 0x521   :  { %1085 = vmatpush.bf16.msrb.mxu3 %v2256_v55 }
 0x522   :  { %v740_v4 = vadd.f32 %v739_v3, %v721_v2  ;;  %v2263_v2 = vld [vmem:[%s2968_s1 + $0x218] sm:$0xff] }
 0x523   :  { %1064 = vmatpush.bf16.msrb.mxu2 %v2250_v44 }
 0x524   :  { %v744_v6 = vadd.f32 %v743_v5, %v740_v4  ;;  %v2246_v5 = vld [vmem:[%s2968_s1 + $0x190] sm:$0xff] }
 0x525   :  { %1086 = vmatpush.bf16.msrb.mxu3 %v2255_v63 }
 0x526   :  { %745 = vrot.lane.b32.xlu2 %v744_v6, %s2322_s25 }
 0x527   :  { %1065 = vmatpush.bf16.msrb.mxu2 %v2249_v53 }
 0x52b   :  { %1066 = vmatpush.bf16.msrb.mxu2 %v2248_v58 }
 0x52f   :  { %1067 = vmatpush.bf16.msrb.mxu2 %v2247_v1 }
 0x533   :  { %1068 = vmatpush.bf16.msrb.mxu2 %v2246_v5 }
 0x580   :  { %v746_v7 = vpop.permute.xlu2 %745 }
 0x581   :  { %v747_v8 = vadd.f32 %v746_v7, %v744_v6  ;;  %v2262_v6 = vld [vmem:[%s2968_s1 + $0x210] sm:$0xff] }
 0x583   :  { %748 = vrot.lane.b32.xlu0 %v747_v8, %s2323_s26 }
 0x5f5   :  { %v749_v51 = vpop.permute.xlu0 %748 }
 0x5f6   :  { %v750_v9 = vadd.f32 %v749_v51, %v747_v8  ;;  %v2253_v8 = vld [vmem:[%s2968_s1 + $0x1c8] sm:$0xff] }
 0x5f8   :  { %751 = vrot.lane.b32.xlu1 %v750_v9, %s2324_s27 }
 0x66a   :  { %v752_v49 = vpop.permute.xlu1 %751 }
 0x66b   :  { %v753_v10 = vadd.f32 %v752_v49, %v750_v9  ;;  %v2245_v9 = vld [vmem:[%s2968_s1 + $0x188] sm:$0xff] }
 0x66c   :  { %v2261_v49 = vld [vmem:[%s2968_s1 + $0x208] sm:$0xff]  ;;  %1069 = vmatpush.bf16.msrb.mxu2 %v2245_v9 }
 0x66d   :  { %754 = vrot.lane.b32.xlu2 %v753_v10, %s2325_s28 }
 0x6c7   :  { %v755_v50 = vpop.permute.xlu2 %754 }
 0x6c8   :  { %v756_v11 = vadd.f32 %v755_v50, %v753_v10  ;;  %v2252_v50 = vld [vmem:[%s2968_s1 + $0x1c0] sm:$0xff] }
 0x6ca   :  { %v757_v12 = vrot.slane %v756_v11, 4 }
 0x6cc   :  { %v758_v13 = vadd.f32 %v757_v12, %v756_v11  ;;  %v2244_v12 = vld [vmem:[%s2968_s1 + $0x180] sm:$0xff] }
 0x6cd   :  { %1070 = vmatpush.bf16.msrb.mxu2 %v2244_v12 }
 0x6ce   :  { %v759_v14 = vrot.slane %v758_v13, 2 }
 0x6d0   :  { %v760_v15 = vadd.f32 %v759_v14, %v758_v13  ;;  %v2260_v14 = vld [vmem:[%s2968_s1 + $0x200] sm:$0xff] }
 0x6d2   :  { %v761_v52 = vrot.slane %v760_v15, 1 }
 0x6d4   :  { %v762_v17 = vadd.f32 %v761_v52, %v760_v15 }
 0x6d6   :  { %v763_v18 = vmul.f32 0.001953125, %v762_v17 }
 0x6d8   :  { %v2652_v19 = vsub.f32 %v733_v59, %v763_v18  ;;  %v2654_v23 = vsub.f32 %v735_v57, %v763_v18  ;;  %v2656_v25 = vsub.f32 %v738_v61, %v763_v18  ;;  %v2658_v26 = vsub.f32 %v740_v4, %v763_v18  ;;  %v2264_v59 = vld [vmem:[%s2968_s1 + $0x220] sm:$0xff]  ;;  %v2254_v4 = vld [vmem:[%s2968_s1 + $0x1d0] sm:$0xff] }
 0x6d9   :  { %1104 = vmatpush.bf16.msra.mxu0 %v2264_v59  ;;  %1087 = vmatpush.bf16.msrb.mxu3 %v2254_v4 }
 0x6da   :  { %v768_v27 = vmul.f32 %v2652_v19, %v2652_v19  ;;  %v769_v28 = vmul.f32 %v2654_v23, %v2654_v23  ;;  %v770_v29 = vmul.f32 %v2656_v25, %v2656_v25  ;;  %v771_v31 = vmul.f32 %v2658_v26, %v2658_v26 }
 0x6dc   :  { %v772_v30 = vadd.f32 %v769_v28, %v768_v27 }
 0x6dd   :  { %1105 = vmatpush.bf16.msra.mxu0 %v2263_v2  ;;  %1088 = vmatpush.bf16.msrb.mxu3 %v2253_v8 }
 0x6de   :  { %v773_v32 = vadd.f32 %v772_v30, %v770_v29  ;;  %v2304_v29 = vld [vmem:[%s2971_s3 + $0x1] ss:$0 sm:$0xff] }
 0x6e0   :  { %v774_v33 = vadd.f32 %v773_v32, %v771_v31 }
 0x6e1   :  { %1106 = vmatpush.bf16.msra.mxu0 %v2262_v6  ;;  %1089 = vmatpush.bf16.msrb.mxu3 %v2252_v50 }
 0x6e2   :  { %775 = vrot.lane.b32.xlu0 %v774_v33, %s2322_s25 }
 0x6e5   :  { %1107 = vmatpush.bf16.msra.mxu0 %v2261_v49 }
 0x6e9   :  { %1108 = vmatpush.bf16.msra.mxu0 %v2260_v14 }
 0x754   :  { %v776_v34 = vpop.permute.xlu0 %775 }
 0x755   :  { %v777_v35 = vadd.f32 %v776_v34, %v774_v33 }
 0x757   :  { %778 = vrot.lane.b32.xlu1 %v777_v35, %s2323_s26 }
 0x7c9   :  { %v779_v36 = vpop.permute.xlu1 %778 }
 0x7ca   :  { %v780_v37 = vadd.f32 %v779_v36, %v777_v35  ;;  %v2308_v35 = vld [vmem:[%s2972_s4 + $0x1] ss:$0 sm:$0xff] }
 0x7cc   :  { %781 = vrot.lane.b32.xlu2 %v780_v37, %s2324_s27 }
 0x826   :  { %v782_v38 = vpop.permute.xlu2 %781 }
 0x827   :  { %v783_v39 = vadd.f32 %v782_v38, %v780_v37 }
 0x829   :  { %784 = vrot.lane.b32.xlu0 %v783_v39, %s2325_s28 }
 0x89b   :  { %v785_v56 = vpop.permute.xlu0 %784 }
 0x89c   :  { %v786_v57 = vadd.f32 %v785_v56, %v783_v39 }
 0x89e   :  { %v787_v61 = vrot.slane %v786_v57, 4 }
 0x8a0   :  { %v788_v0 = vadd.f32 %v787_v61, %v786_v57 }
 0x8a2   :  { %v789_v3 = vrot.slane %v788_v0, 2 }
 0x8a4   :  { %v790_v7 = vadd.f32 %v789_v3, %v788_v0 }
 0x8a6   :  { %v791_v51 = vrot.slane %v790_v7, 1 }
 0x8a8   :  { %v792_v10 = vadd.f32 %v791_v51, %v790_v7 }
 0x8aa   :  { %v793_v11 = vmul.f32 0.001953125, %v792_v10 }
 0x8ac   :  { %v794_v13 = vadd.f32 1e-05, %v793_v11 }
 0x8ae   :  { %2315 = vrsqrt.f32 %v794_v13  ;;  %vm801_vm15 = vweird.f32 %v794_v13 }
 0x8b4   :  { %v2316_v15 = vpop.eup %2315 }
 0x8b5   :  { %v796_v52 = vmul.f32 %v2316_v15, %v794_v13  ;;  %vm802_vm14 = vweird.f32 %v2316_v15  ;;  %v2309_v13 = vld [vmem:[%s2969_s2 + $0x2] ss:$0 sm:$0xff] }
 0x8b6   :  { %vm803_vm2 = vmor %vm801_vm15, %vm802_vm14 }
 0x8b7   :  { %v797_v17 = vmul.f32 %v2316_v15, %v796_v52 }
 0x8b9   :  { %v798_v18 = vmul.f32 0.5, %v797_v17 }
 0x8bb   :  { %v799_v27 = vsub.f32 1.5, %v798_v18 }
 0x8bd   :  { %v800_v28 = vmul.f32 %v2316_v15, %v799_v27 }
 0x8bf   :  { %v804_v30 = vsel %vm803_vm2, %v2316_v15, %v800_v28 }
 0x8c0   :  { %v807_v31 = vmul.f32 %v804_v30, %v2656_v25  ;;  %v808_v32 = vmul.f32 %v804_v30, %v2658_v26  ;;  %v805_v33 = vmul.f32 %v804_v30, %v2652_v19  ;;  %v806_v34 = vmul.f32 %v804_v30, %v2654_v23 }
 0x8c2   :  { %v816_v36 = vmul.f32 %v2304_v29, %v807_v31  ;;  %v817_v37 = vmul.f32 %v2304_v29, %v808_v32  ;;  %v814_v38 = vmul.f32 %v2304_v29, %v805_v33  ;;  %v815_v39 = vmul.f32 %v2304_v29, %v806_v34 }
 0x8c4   :  { %v823_v40 = vadd.f32 %v2308_v35, %v814_v38  ;;  %v824_v41 = vadd.f32 %v2308_v35, %v815_v39  ;;  %v826_v42 = vadd.f32 %v2308_v35, %v817_v37  ;;  %v825_v43 = vadd.f32 %v2308_v35, %v816_v36 }
 0x8c6   :  { %v827_v25 = vadd.f32 %v823_v40, %v2415_v20  ;;  %v828_v26 = vadd.f32 %v824_v41, %v2420_v21  ;;  %v830_v19 = vadd.f32 %v826_v42, %v2425_v22  ;;  %v829_v23 = vadd.f32 %v825_v43, %v2431_v24 }
 0x8c8   :  { %v2758_v44 = vmax.f32 %v827_v25, 0.0  ;;  %v2760_v46 = vmax.f32 %v828_v26, 0.0  ;;  %v2762_v48 = vmax.f32 %v830_v19, 0.0  ;;  %v2764_v53 = vmax.f32 %v829_v23, 0.0 }
 0x8ca   :  { %v860_v54 = vpack.c.bf16 %v2760_v46, %v2758_v44  ;;  %v835_v55 = vrot.slane %v2758_v44, 7  ;;  %v836_v20 = vrot.slane %v2760_v46, 7  ;;  %v838_v21 = vrot.slane %v2762_v48, 7 }
 0x8cb   :  { %v847_v22 = vrot.slane %v2758_v44, 1  ;;  %v848_v24 = vrot.slane %v2760_v46, 1  ;;  %v849_v56 = vrot.slane %v2764_v53, 1  ;;  %v837_v1 = vrot.slane %v2764_v53, 7 }
 0x8cc   :  { %1090 = vmatmul.bf16.vlgmr.msrb.gmra.mxu3 %v860_v54  ;;  %v841_v57 = vsel %vm89_vm0, %v835_v55, %v836_v20  ;;  %v842_v58 = vsel %vm89_vm0, %v838_v21, %v835_v55  ;;  %v850_v2 = vrot.slane %v2762_v48, 1  ;;  %v863_v3 = vpack.c.bf16 %v2762_v48, %v2764_v53 }
 0x8cd   :  { %v2017_v59 = vpack.c.bf16 %v841_v57, %v842_v58  ;;  %v852_v61 = vsel %vm102_vm1, %v848_v24, %v849_v56  ;;  %v853_v63 = vsel %vm102_vm1, %v847_v22, %v848_v24  ;;  %v839_v4 = vsel %vm89_vm0, %v837_v1, %v838_v21 }
 0x8ce   :  { %v2025_v0 = vpack.c.bf16 %v852_v61, %v853_v63  ;;  %v840_v5 = vsel %vm89_vm0, %v836_v20, %v837_v1  ;;  %v851_v6 = vsel %vm102_vm1, %v849_v56, %v850_v2  ;;  %v854_v7 = vsel %vm102_vm1, %v850_v2, %v847_v22 }
 0x8cf   :  { %2018 = vmatmul.msk.bf16.vlgmr.msrb.gmra.mxu2 %vm2471_vm5, %v2017_v59  ;;  %v2021_v8 = vpack.c.bf16 %v839_v4, %v840_v5  ;;  %v2029_v51 = vpack.c.bf16 %v854_v7, %v851_v6 }
 0x8d0   :  { %2026 = vmatmul.msk.bf16.vlgmr.msra.gmra.mxu0 %vm2476_vm6, %v2025_v0 }
 0x8dc   :  { %1095 = vmatmul.bf16.gmra.mxu3 %v863_v3 }
 0x8df   :  { %2022 = vmatmul.msk.bf16.gmra.mxu2 %vm2499_vm9, %v2021_v8 }
 0x8e0   :  { %2030 = vmatmul.msk.bf16.gmra.mxu0 %vm2504_vm10, %v2029_v51 }
 0x94d   :  { %v1110_v49 = vpop.f32.mrf.mxu0 }
 0x94f   :  { %v1091_v9 = vpop.f32.mrf.mxu3 }
 0x952   :  { %v1072_v10 = vpop.f32.mrf.mxu2 }
 0x953   :  { %v1073_v17 = vadd.f32 %v2309_v13, %v1072_v10 }
 0x955   :  { %v1112_v11 = vpop.f32.mrf.mxu0  ;;  %v1092_v29 = vadd.f32 %v1091_v9, %v1073_v17  ;;  %v2274_v17 = vld [vmem:[%s2968_s1 + $0x270] sm:$0xff] }
 0x957   :  { %v1093_v50 = vpop.f32.mrf.mxu3  ;;  %v1111_v33 = vadd.f32 %v1110_v49, %v1092_v29  ;;  %v2280_v29 = vld [vmem:[%s2968_s1 + $0x2a0] sm:$0xff] }
 0x95a   :  { %v1074_v12 = vpop.f32.mrf.mxu2 }
 0x95b   :  { %v1075_v14 = vadd.f32 %v2309_v13, %v1074_v12  ;;  %v2283_v12 = vld [vmem:[%s2968_s1 + $0x2b8] sm:$0xff] }
 0x95c   :  { %1456 = vmatpush.bf16.msra.mxu2 %v2283_v12 }
 0x95d   :  { %v1115_v27 = vpop.f32.mrf.mxu0  ;;  %v1094_v28 = vadd.f32 %v1093_v50, %v1075_v14  ;;  %v2275_v14 = vld [vmem:[%s2968_s1 + $0x278] sm:$0xff] }
 0x95e   :  { %1437 = vmatpush.bf16.msra.mxu1 %v2275_v14 }
 0x95f   :  { %v1096_v15 = vpop.f32.mrf.mxu3  ;;  %v1113_v31 = vadd.f32 %v1112_v11, %v1094_v28  ;;  %v2273_v28 = vld [vmem:[%s2968_s1 + $0x268] sm:$0xff] }
 0x961   :  { %v1120_v37 = vadd.f32 %v1113_v31, %v1111_v33 }
 0x962   :  { %v1077_v52 = vpop.f32.mrf.mxu2  ;;  %1438 = vmatpush.bf16.msra.mxu1 %v2274_v17 }
 0x963   :  { %v1078_v18 = vadd.f32 %v2309_v13, %v1077_v52  ;;  %v2290_v52 = vld [vmem:[%s2968_s1 + $0x2f0] sm:$0xff] }
 0x965   :  { %v1097_v30 = vadd.f32 %v1096_v15, %v1078_v18  ;;  %v1117_v39 = vpop.f32.mrf.mxu0  ;;  %v2282_v15 = vld [vmem:[%s2968_s1 + $0x2b0] sm:$0xff]  ;;  %v2281_v18 = vld [vmem:[%s2968_s1 + $0x2a8] sm:$0xff] }
 0x966   :  { %1457 = vmatpush.bf16.msra.mxu2 %v2282_v15  ;;  %1439 = vmatpush.bf16.msra.mxu1 %v2273_v28 }
 0x967   :  { %v1116_v34 = vadd.f32 %v1115_v27, %v1097_v30  ;;  %v1098_v36 = vpop.f32.mrf.mxu3  ;;  %v2289_v27 = vld [vmem:[%s2968_s1 + $0x2e8] sm:$0xff] }
 0x969   :  { %v1121_v41 = vadd.f32 %v1120_v37, %v1116_v34  ;;  %v2271_v37 = vld [vmem:[%s2968_s1 + $0x258] sm:$0xff] }
 0x96a   :  { %v1079_v32 = vpop.f32.mrf.mxu2  ;;  %1458 = vmatpush.bf16.msra.mxu2 %v2281_v18 }
 0x96b   :  { %v1080_v35 = vadd.f32 %v2309_v13, %v1079_v32  ;;  %v2291_v13 = vld [vmem:[%s2968_s1 + $0x2f8] sm:$0xff]  ;;  %v2272_v32 = vld [vmem:[%s2968_s1 + $0x260] sm:$0xff] }
 0x96c   :  { %1475 = vmatpush.bf16.msra.mxu3 %v2291_v13  ;;  %1440 = vmatpush.bf16.msra.mxu1 %v2272_v32 }
 0x96d   :  { %v1099_v38 = vadd.f32 %v1098_v36, %v1080_v35  ;;  %v2287_v36 = vld [vmem:[%s2968_s1 + $0x2d8] sm:$0xff] }
 0x96e   :  { %1459 = vmatpush.bf16.msra.mxu2 %v2280_v29 }
 0x96f   :  { %v1118_v40 = vadd.f32 %v1117_v39, %v1099_v38  ;;  %v2278_v39 = vld [vmem:[%s2968_s1 + $0x290] sm:$0xff] }
 0x970   :  { %1476 = vmatpush.bf16.msra.mxu3 %v2290_v52  ;;  %1441 = vmatpush.bf16.msra.mxu1 %v2271_v37 }
 0x971   :  { %v1122_v42 = vadd.f32 %v1121_v41, %v1118_v40  ;;  %v2286_v41 = vld [vmem:[%s2968_s1 + $0x2d0] sm:$0xff] }
 0x973   :  { %1123 = vrot.lane.b32.xlu1 %v1122_v42, %s2322_s25 }
 0x974   :  { %1477 = vmatpush.bf16.msra.mxu3 %v2289_v27 }
 0x9e5   :  { %v1124_v43 = vpop.permute.xlu1 %1123 }
 0x9e6   :  { %v1125_v25 = vadd.f32 %v1124_v43, %v1122_v42  ;;  %v2270_v42 = vld [vmem:[%s2968_s1 + $0x250] sm:$0xff]  ;;  %v2277_v43 = vld [vmem:[%s2968_s1 + $0x288] sm:$0xff] }
 0x9e7   :  { %1442 = vmatpush.bf16.msra.mxu1 %v2270_v42 }
 0x9e8   :  { %1126 = vrot.lane.b32.xlu2 %v1125_v25, %s2323_s26 }
 0xa42   :  { %v1127_v26 = vpop.permute.xlu2 %1126 }
 0xa43   :  { %v1128_v19 = vadd.f32 %v1127_v26, %v1125_v25  ;;  %v2285_v26 = vld [vmem:[%s2968_s1 + $0x2c8] sm:$0xff] }
 0xa45   :  { %1129 = vrot.lane.b32.xlu0 %v1128_v19, %s2324_s27 }
 0xab7   :  { %v1130_v23 = vpop.permute.xlu0 %1129 }
 0xab8   :  { %v1131_v54 = vadd.f32 %v1130_v23, %v1128_v19  ;;  %v2269_v19 = vld [vmem:[%s2968_s1 + $0x248] sm:$0xff] }
 0xab9   :  { %1443 = vmatpush.bf16.msra.mxu1 %v2269_v19 }
 0xaba   :  { %1132 = vrot.lane.b32.xlu1 %v1131_v54, %s2325_s28 }
 0xb2c   :  { %v1133_v55 = vpop.permute.xlu1 %1132 }
 0xb2d   :  { %v1134_v20 = vadd.f32 %v1133_v55, %v1131_v54  ;;  %v2276_v54 = vld [vmem:[%s2968_s1 + $0x280] sm:$0xff] }
 0xb2f   :  { %v1135_v21 = vrot.slane %v1134_v20, 4 }
 0xb31   :  { %v1136_v22 = vadd.f32 %v1135_v21, %v1134_v20  ;;  %v2284_v20 = vld [vmem:[%s2968_s1 + $0x2c0] sm:$0xff] }
 0xb32   :  { %v2268_v21 = vld [vmem:[%s2968_s1 + $0x240] sm:$0xff] }
 0xb33   :  { %v1137_v24 = vrot.slane %v1136_v22, 2  ;;  %1444 = vmatpush.bf16.msra.mxu1 %v2268_v21 }
 0xb35   :  { %v1138_v56 = vadd.f32 %v1137_v24, %v1136_v22 }
 0xb37   :  { %v1139_v57 = vrot.slane %v1138_v56, 1 }
 0xb39   :  { %v1140_v58 = vadd.f32 %v1139_v57, %v1138_v56 }
 0xb3b   :  { %v1141_v59 = vmul.f32 0.001953125, %v1140_v58 }
 0xb3d   :  { %v2809_v61 = vsub.f32 %v1111_v33, %v1141_v59  ;;  %v2811_v63 = vsub.f32 %v1113_v31, %v1141_v59  ;;  %v2813_v0 = vsub.f32 %v1116_v34, %v1141_v59  ;;  %v2815_v1 = vsub.f32 %v1118_v40, %v1141_v59  ;;  %v2288_v31 = vld [vmem:[%s2968_s1 + $0x2e0] sm:$0xff]  ;;  %v2279_v34 = vld [vmem:[%s2968_s1 + $0x298] sm:$0xff] }
 0xb3e   :  { %1478 = vmatpush.bf16.msra.mxu3 %v2288_v31  ;;  %1460 = vmatpush.bf16.msra.mxu2 %v2279_v34 }
 0xb3f   :  { %v1146_v2 = vmul.f32 %v2809_v61, %v2809_v61  ;;  %v1147_v3 = vmul.f32 %v2811_v63, %v2811_v63  ;;  %v1148_v4 = vmul.f32 %v2813_v0, %v2813_v0  ;;  %v1149_v6 = vmul.f32 %v2815_v1, %v2815_v1 }
 0xb41   :  { %v1150_v5 = vadd.f32 %v1147_v3, %v1146_v2 }
 0xb42   :  { %1479 = vmatpush.bf16.msra.mxu3 %v2287_v36  ;;  %1461 = vmatpush.bf16.msra.mxu2 %v2278_v39 }
 0xb43   :  { %v1151_v7 = vadd.f32 %v1150_v5, %v1148_v4  ;;  %v2310_v4 = vld [vmem:[%s2971_s3 + $0x2] ss:$0 sm:$0xff] }
 0xb45   :  { %v1152_v8 = vadd.f32 %v1151_v7, %v1149_v6 }
 0xb46   :  { %1480 = vmatpush.bf16.msra.mxu3 %v2286_v41  ;;  %1462 = vmatpush.bf16.msra.mxu2 %v2277_v43 }
 0xb47   :  { %1153 = vrot.lane.b32.xlu2 %v1152_v8, %s2322_s25 }
 0xb4a   :  { %1481 = vmatpush.bf16.msra.mxu3 %v2285_v26  ;;  %1463 = vmatpush.bf16.msra.mxu2 %v2276_v54 }
 0xb4e   :  { %1482 = vmatpush.bf16.msra.mxu3 %v2284_v20 }
 0xba1   :  { %v1154_v51 = vpop.permute.xlu2 %1153 }
 0xba2   :  { %v1155_v9 = vadd.f32 %v1154_v51, %v1152_v8 }
 0xba4   :  { %1156 = vrot.lane.b32.xlu0 %v1155_v9, %s2323_s26 }
 0xc16   :  { %v1157_v49 = vpop.permute.xlu0 %1156 }
 0xc17   :  { %v1158_v10 = vadd.f32 %v1157_v49, %v1155_v9  ;;  %v2311_v9 = vld [vmem:[%s2972_s4 + $0x2] ss:$0 sm:$0xff] }
 0xc19   :  { %1159 = vrot.lane.b32.xlu1 %v1158_v10, %s2324_s27 }
 0xc8b   :  { %v1160_v50 = vpop.permute.xlu1 %1159 }
 0xc8c   :  { %v1161_v11 = vadd.f32 %v1160_v50, %v1158_v10 }
 0xc8e   :  { %1162 = vrot.lane.b32.xlu2 %v1161_v11, %s2325_s28 }
 0xce8   :  { %v1163_v30 = vpop.permute.xlu2 %1162 }
 0xce9   :  { %v1164_v33 = vadd.f32 %v1163_v30, %v1161_v11 }
 0xceb   :  { %v1165_v35 = vrot.slane %v1164_v33, 4 }
 0xced   :  { %v1166_v38 = vadd.f32 %v1165_v35, %v1164_v33 }
 0xcef   :  { %v1167_v40 = vrot.slane %v1166_v38, 2 }
 0xcf1   :  { %v1168_v25 = vadd.f32 %v1167_v40, %v1166_v38 }
 0xcf3   :  { %v1169_v23 = vrot.slane %v1168_v25, 1 }
 0xcf5   :  { %v1170_v55 = vadd.f32 %v1169_v23, %v1168_v25 }
 0xcf7   :  { %v1171_v22 = vmul.f32 0.001953125, %v1170_v55 }
 0xcf9   :  { %v1172_v24 = vadd.f32 1e-05, %v1171_v22 }
 0xcfb   :  { %2317 = vrsqrt.f32 %v1172_v24  ;;  %vm1179_vm4 = vweird.f32 %v1172_v24 }
 0xd01   :  { %v2318_v56 = vpop.eup %2317 }
 0xd02   :  { %v1174_v57 = vmul.f32 %v2318_v56, %v1172_v24  ;;  %vm1180_vm3 = vweird.f32 %v2318_v56 }
 0xd03   :  { %vm1181_vm7 = vmor %vm1179_vm4, %vm1180_vm3 }
 0xd04   :  { %v1175_v58 = vmul.f32 %v2318_v56, %v1174_v57 }
 0xd06   :  { %v1176_v59 = vmul.f32 0.5, %v1175_v58 }
 0xd08   :  { %v1177_v2 = vsub.f32 1.5, %v1176_v59 }
 0xd0a   :  { %v1178_v3 = vmul.f32 %v2318_v56, %v1177_v2 }
 0xd0c   :  { %v1182_v5 = vsel %vm1181_vm7, %v2318_v56, %v1178_v3 }
 0xd0d   :  { %v1185_v6 = vmul.f32 %v1182_v5, %v2813_v0  ;;  %v1186_v7 = vmul.f32 %v1182_v5, %v2815_v1  ;;  %v1183_v8 = vmul.f32 %v1182_v5, %v2809_v61  ;;  %v1184_v51 = vmul.f32 %v1182_v5, %v2811_v63 }
 0xd0f   :  { %v1194_v49 = vmul.f32 %v2310_v4, %v1185_v6  ;;  %v1195_v10 = vmul.f32 %v2310_v4, %v1186_v7  ;;  %v1192_v50 = vmul.f32 %v2310_v4, %v1183_v8  ;;  %v1193_v11 = vmul.f32 %v2310_v4, %v1184_v51 }
 0xd11   :  { %v1201_v12 = vadd.f32 %v2311_v9, %v1192_v50  ;;  %v1202_v13 = vadd.f32 %v2311_v9, %v1193_v11  ;;  %v1204_v14 = vadd.f32 %v2311_v9, %v1195_v10  ;;  %v1203_v15 = vadd.f32 %v2311_v9, %v1194_v49 }
 0xd13   :  { %v1205_v52 = vmax.f32 %v1201_v12, 0.0  ;;  %v1206_v0 = vmax.f32 %v1202_v13, 0.0  ;;  %v1208_v17 = vmax.f32 %v1204_v14, 0.0  ;;  %v1207_v1 = vmax.f32 %v1203_v15, 0.0 }
 0xd15   :  { %v1209_v18 = vrot.slane %v1205_v52, 7  ;;  %v1210_v61 = vrot.slane %v1206_v0, 7  ;;  %v1221_v27 = vrot.slane %v1205_v52, 1  ;;  %v1222_v63 = vrot.slane %v1206_v0, 1 }
 0xd16   :  { %v1234_v28 = vpack.c.bf16 %v1206_v0, %v1205_v52  ;;  %v1212_v29 = vrot.slane %v1208_v17, 7  ;;  %v1223_v30 = vrot.slane %v1207_v1, 1  ;;  %v1211_v37 = vrot.slane %v1207_v1, 7 }
 0xd17   :  { %v1215_v31 = vsel %vm89_vm0, %v1209_v18, %v1210_v61  ;;  %v1227_v32 = vsel %vm102_vm1, %v1221_v27, %v1222_v63  ;;  %v1224_v38 = vrot.slane %v1208_v17, 1  ;;  %v1237_v39 = vpack.c.bf16 %v1208_v17, %v1207_v1 }
 0xd18   :  { %1464 = vmatmul.bf16.vlgmr.msra.gmra.mxu2 %v1234_v28  ;;  %v1216_v33 = vsel %vm89_vm0, %v1212_v29, %v1209_v18  ;;  %v1226_v34 = vsel %vm102_vm1, %v1222_v63, %v1223_v30  ;;  %v1213_v40 = vsel %vm89_vm0, %v1211_v37, %v1212_v29  ;;  %v1214_v41 = vsel %vm89_vm0, %v1210_v61, %v1211_v37 }
 0xd19   :  { %v2180_v35 = vpack.c.bf16 %v1215_v31, %v1216_v33  ;;  %v2188_v36 = vpack.c.bf16 %v1226_v34, %v1227_v32  ;;  %v1225_v42 = vsel %vm102_vm1, %v1223_v30, %v1224_v38  ;;  %v1228_v43 = vsel %vm102_vm1, %v1224_v38, %v1221_v27 }
 0xd1a   :  { %v2184_v45 = vpack.c.bf16 %v1213_v40, %v1214_v41  ;;  %v2192_v25 = vpack.c.bf16 %v1228_v43, %v1225_v42 }
 0xd1b   :  { %2181 = vmatmul.msk.bf16.vlgmr.msra.gmra.mxu1 %vm2471_vm5, %v2180_v35  ;;  %2189 = vmatmul.msk.bf16.vlgmr.msra.gmra.mxu3 %vm2476_vm6, %v2188_v36 }
 0xd28   :  { %1469 = vmatmul.bf16.gmra.mxu2 %v1237_v39 }
 0xd2b   :  { %2185 = vmatmul.msk.bf16.gmra.mxu1 %vm2499_vm9, %v2184_v45  ;;  %2193 = vmatmul.msk.bf16.gmra.mxu3 %vm2504_vm10, %v2192_v25 }
 0xd98   :  { %v1446_v47 = vpop.f32.mrf.mxu1 }
 0xd99   :  { %v1447_v22 = vadd.f32 %v2312_v16, %v1446_v47 }
 0xd9b   :  { %v1465_v26 = vpop.f32.mrf.mxu2 }
 0xd9c   :  { %v1466_v58 = vadd.f32 %v1465_v26, %v1447_v22 }
 0xd9e   :  { %v1484_v19 = vpop.f32.mrf.mxu3 }
 0xd9f   :  { %v1485_v4 = vadd.f32 %v1484_v19, %v1466_v58 }
 0xda0   :  { %v1448_v23 = vpop.f32.mrf.mxu1 }
 0xda1   :  { %v1449_v21 = vadd.f32 %v2312_v16, %v1448_v23 }
 0xda3   :  { %v1467_v54 = vpop.f32.mrf.mxu2 }
 0xda4   :  { %v1468_v60 = vadd.f32 %v1467_v54, %v1449_v21 }
 0xda6   :  { %v1486_v55 = vpop.f32.mrf.mxu3 }
 0xda7   :  { %v1487_v2 = vadd.f32 %v1486_v55, %v1468_v60 }
 0xda8   :  { %v1451_v20 = vpop.f32.mrf.mxu1 }
 0xda9   :  { %v1452_v24 = vadd.f32 %v2312_v16, %v1451_v20  ;;  %v1494_v8 = vadd.f32 %v1487_v2, %v1485_v4 }
 0xdab   :  { %v1470_v56 = vpop.f32.mrf.mxu2 }
 0xdac   :  { %v1471_v62 = vadd.f32 %v1470_v56, %v1452_v24 }
 0xdae   :  { %v1489_v57 = vpop.f32.mrf.mxu3 }
 0xdaf   :  { %v1490_v5 = vadd.f32 %v1489_v57, %v1471_v62 }
 0xdb0   :  { %v1453_v59 = vpop.f32.mrf.mxu1 }
 0xdb1   :  { %v1454_v3 = vadd.f32 %v2312_v16, %v1453_v59  ;;  %v1495_v9 = vadd.f32 %v1494_v8, %v1490_v5  ;;  %v2305_v59 = vld [vmem:[%s2971_s3 + $0x3] ss:$0 sm:$0xff] }
 0xdb3   :  { %v1472_v6 = vpop.f32.mrf.mxu2 }
 0xdb4   :  { %v1473_v7 = vadd.f32 %v1472_v6, %v1454_v3  ;;  %v2306_v3 = vld [vmem:[%s2972_s4 + $0x3] ss:$0 sm:$0xff] }
 0xdb6   :  { %v1491_v51 = vpop.f32.mrf.mxu3 }
 0xdb7   :  { %v1492_v49 = vadd.f32 %v1491_v51, %v1473_v7 }
 0xdb9   :  { %v1496_v10 = vadd.f32 %v1495_v9, %v1492_v49 }
 0xdbb   :  { %1497 = vrot.lane.b32.xlu0 %v1496_v10, %s2322_s25 }
 0xe2d   :  { %v1498_v50 = vpop.permute.xlu0 %1497 }
 0xe2e   :  { %v1499_v11 = vadd.f32 %v1498_v50, %v1496_v10 }
 0xe30   :  { %1500 = vrot.lane.b32.xlu1 %v1499_v11, %s2323_s26 }
 0xea2   :  { %v1501_v12 = vpop.permute.xlu1 %1500 }
 0xea3   :  { %v1502_v13 = vadd.f32 %v1501_v12, %v1499_v11 }
 0xea5   :  { %1503 = vrot.lane.b32.xlu2 %v1502_v13, %s2324_s27 }
 0xeff   :  { %v1504_v14 = vpop.permute.xlu2 %1503 }
 0xf00   :  { %v1505_v15 = vadd.f32 %v1504_v14, %v1502_v13 }
 0xf02   :  { %1506 = vrot.lane.b32.xlu0 %v1505_v15, %s2325_s28 }
 0xf74   :  { %v1507_v52 = vpop.permute.xlu0 %1506 }
 0xf75   :  { %v1508_v0 = vadd.f32 %v1507_v52, %v1505_v15 }
 0xf77   :  { %v1509_v17 = vrot.slane %v1508_v0, 4 }
 0xf79   :  { %v1510_v1 = vadd.f32 %v1509_v17, %v1508_v0 }
 0xf7b   :  { %v1511_v18 = vrot.slane %v1510_v1, 2 }
 0xf7d   :  { %v1512_v61 = vadd.f32 %v1511_v18, %v1510_v1 }
 0xf7f   :  { %v1513_v27 = vrot.slane %v1512_v61, 1 }
 0xf81   :  { %v1514_v63 = vadd.f32 %v1513_v27, %v1512_v61 }
 0xf83   :  { %v1515_v28 = vmul.f32 0.001953125, %v1514_v63 }
 0xf85   :  { %v1516_v29 = vsub.f32 %v1485_v4, %v1515_v28  ;;  %v1517_v30 = vsub.f32 %v1487_v2, %v1515_v28  ;;  %v1518_v31 = vsub.f32 %v1490_v5, %v1515_v28  ;;  %v1519_v32 = vsub.f32 %v1492_v49, %v1515_v28 }
 0xf87   :  { %v1520_v33 = vmul.f32 %v1516_v29, %v1516_v29  ;;  %v1521_v34 = vmul.f32 %v1517_v30, %v1517_v30  ;;  %v1522_v35 = vmul.f32 %v1518_v31, %v1518_v31  ;;  %v1523_v37 = vmul.f32 %v1519_v32, %v1519_v32 }
 0xf89   :  { %v1524_v36 = vadd.f32 %v1521_v34, %v1520_v33 }
 0xf8b   :  { %v1525_v38 = vadd.f32 %v1524_v36, %v1522_v35 }
 0xf8d   :  { %v1526_v39 = vadd.f32 %v1525_v38, %v1523_v37 }
 0xf8f   :  { %1527 = vrot.lane.b32.xlu1 %v1526_v39, %s2322_s25 }
0x1001   :  { %v1528_v40 = vpop.permute.xlu1 %1527 }
0x1002   :  { %v1529_v41 = vadd.f32 %v1528_v40, %v1526_v39 }
0x1004   :  { %1530 = vrot.lane.b32.xlu2 %v1529_v41, %s2323_s26 }
0x105e   :  { %v1531_v42 = vpop.permute.xlu2 %1530 }
0x105f   :  { %v1532_v43 = vadd.f32 %v1531_v42, %v1529_v41 }
0x1061   :  { %1533 = vrot.lane.b32.xlu0 %v1532_v43, %s2324_s27 }
0x10d3   :  { %v1534_v45 = vpop.permute.xlu0 %1533 }
0x10d4   :  { %v1535_v25 = vadd.f32 %v1534_v45, %v1532_v43 }
0x10d6   :  { %1536 = vrot.lane.b32.xlu1 %v1535_v25, %s2325_s28 }
0x1148   :  { %v1537_v47 = vpop.permute.xlu1 %1536 }
0x1149   :  { %v1538_v26 = vadd.f32 %v1537_v47, %v1535_v25 }
0x114b   :  { %v1539_v19 = vrot.slane %v1538_v26, 4 }
0x114d   :  { %v1540_v23 = vadd.f32 %v1539_v19, %v1538_v26 }
0x114f   :  { %v1541_v54 = vrot.slane %v1540_v23, 2 }
0x1151   :  { %v1542_v55 = vadd.f32 %v1541_v54, %v1540_v23 }
0x1153   :  { %v1543_v16 = vrot.slane %v1542_v55, 1 }
0x1155   :  { %v1544_v20 = vadd.f32 %v1543_v16, %v1542_v55 }
0x1157   :  { %v1545_v21 = vmul.f32 0.001953125, %v1544_v20 }
0x1159   :  { %v1546_v22 = vadd.f32 1e-05, %v1545_v21 }
0x115b   :  { %2319 = vrsqrt.f32 %v1546_v22  ;;  %vm1553_vm1 = vweird.f32 %v1546_v22 }
0x1161   :  { %v2320_v24 = vpop.eup %2319 }
0x1162   :  { %v1548_v56 = vmul.f32 %v2320_v24, %v1546_v22  ;;  %vm1554_vm0 = vweird.f32 %v2320_v24 }
0x1163   :  { %vm1555_vm5 = vmor %vm1553_vm1, %vm1554_vm0 }
0x1164   :  { %v1549_v60 = vmul.f32 %v2320_v24, %v1548_v56 }
0x1166   :  { %v1550_v57 = vmul.f32 0.5, %v1549_v60 }
0x1168   :  { %v1551_v58 = vsub.f32 1.5, %v1550_v57 }
0x116a   :  { %v1552_v62 = vmul.f32 %v2320_v24, %v1551_v58 }
0x116c   :  { %v1556_v2 = vsel %vm1555_vm5, %v2320_v24, %v1552_v62 }
0x116d   :  { %v1557_v4 = vmul.f32 %v1556_v2, %v1516_v29  ;;  %v1558_v5 = vmul.f32 %v1556_v2, %v1517_v30  ;;  %v1559_v6 = vmul.f32 %v1556_v2, %v1518_v31  ;;  %v1560_v7 = vmul.f32 %v1556_v2, %v1519_v32 }
0x116f   :  { %v1566_v8 = vmul.f32 %v2305_v59, %v1557_v4  ;;  %v1567_v51 = vmul.f32 %v2305_v59, %v1558_v5  ;;  %v1568_v9 = vmul.f32 %v2305_v59, %v1559_v6  ;;  %v1569_v49 = vmul.f32 %v2305_v59, %v1560_v7 }
0x1171   :  { %v1575_v10 = vadd.f32 %v2306_v3, %v1566_v8  ;;  %v1576_v50 = vadd.f32 %v2306_v3, %v1567_v51  ;;  %v1577_v11 = vadd.f32 %v2306_v3, %v1568_v9  ;;  %v1578_v12 = vadd.f32 %v2306_v3, %v1569_v49 }
0x1173   :  { %v1579_v13 = vadd.f32 %v1575_v10, %v2758_v44  ;;  %v1580_v14 = vadd.f32 %v1576_v50, %v2760_v46  ;;  %v1581_v15 = vadd.f32 %v1577_v11, %v2764_v53  ;;  %v1582_v52 = vadd.f32 %v1578_v12, %v2762_v48 }
0x1175   :  { %v1583_v0 = vmax.f32 %v1579_v13, 0.0  ;;  %v1584_v17 = vmax.f32 %v1580_v14, 0.0  ;;  %v1585_v1 = vmax.f32 %v1581_v15, 0.0  ;;  %v1586_v18 = vmax.f32 %v1582_v52, 0.0 }
0x1177   :  { %1587 = vst [vmem:[%s2973_s5] sm:$0xff] %v1583_v0 }
0x1178   :  { %1588 = vst [vmem:[%s2973_s5 + $0x8] sm:$0xff] %v1584_v17 }
0x1179   :  { %1589 = vst [vmem:[%s2973_s5 + $0x10] sm:$0xff] %v1585_v1 }
0x117a   :  { %1590 = vst [vmem:[%s2973_s5 + $0x18] sm:$0xff] %v1586_v18 }

</bundles_post_ra>
